<compile_context>
chip_gen: v7x
topology: tpu7x:2x2x1
jax: 0.10.0
libtpu: 0.0.40
codegen_flags: <defaults>
</compile_context>

<pallas_src>
import functools

import jax
import jax.numpy as jnp
from jax.experimental import pallas as pl
from jax.experimental.pallas import tpu as pltpu


def _levm_kernel(x_ref, cond_ref, interp_ref, mask_ref, p_ref, o_ref, *,
                 offs, B, C, C2, Cf, H, W, eps):
    f32 = jnp.float32
    n_taps = 9
    HW = H * W
    N = x_ref.shape[1]            # B * H * W (batch folded into lanes)

    x = x_ref[...]                # (C, N)
    cond = cond_ref[...]          # (cond_c, B*HcWc)
    masks = mask_ref[...]         # (9 + B, N): 9 depthwise-tap masks, B image selectors
    P = p_ref[...]                # (8, 41) packed small weights / bias columns

    (o_wci, o_bci, o_w1, o_b1, o_w2, o_b2,
     o_wsca, o_w3, o_w4, o_b4, o_w5) = offs

    def mat_cols(off, rows, h, bias_off=None):
        # 1x1 conv as unrolled VPU broadcast-FMA: out = sum_c w[:, c] * h[c, :]
        acc = P[:rows, off:off + 1] * h[0:1, :]
        if bias_off is not None:
            acc = acc + P[:rows, bias_off:bias_off + 1]
        for c in range(1, h.shape[0]):
            acc = acc + P[:rows, off + c:off + c + 1] * h[c:c + 1, :]
        return acc

    # --- cond path: 1x1 intro conv (FMA over cond_c) reassociated BEFORE the
    #     bilinear resize; resize is one block-diagonal MXU matmul (align_corners=True).
    cond_small = mat_cols(o_wci, C, cond)                               # (C, B*HcWc)
    cond_p = jnp.dot(cond_small, interp_ref[...],
                     preferred_element_type=f32)                        # (C, N)
    x = x + cond_p + P[:C, o_bci:o_bci + 1]
    inp = x

    # TODO(synk): LayerNorm2d is not defined in the spec; assumed NAFNet-style
    # per-pixel LayerNorm over channels, eps=1e-6 (affine folded into conv1/conv4).
    def layer_norm(v):
        mu = jnp.mean(v, axis=0, keepdims=True)
        ex2 = jnp.mean(v * v, axis=0, keepdims=True)
        var = ex2 - mu * mu
        return (v - mu) * jax.lax.rsqrt(var + eps)

    # --- norm1 (+ folded affine) + conv1 (1x1, C -> C2)
    h = mat_cols(o_w1, C2, layer_norm(x), bias_off=o_b1)                # (C2, N)

    # --- conv2: 3x3 depthwise, zero padding -> masked lane rotations.
    #     Center tap (k=4) seeds the accumulator (no roll, mask is all ones).
    dw = P[:C2, o_w2 + 4:o_w2 + 5] * h + P[:C2, o_b2:o_b2 + 1]
    k = 0
    for dy in (-1, 0, 1):
        for dx in (-1, 0, 1):
            if dy == 0 and dx == 0:
                k += 1
                continue
            s = dy * W + dx
            shifted = pltpu.roll(h, (-s) % N, axis=1)
            dw = dw + (shifted * masks[k:k + 1, :]) * P[:C2, o_w2 + k:o_w2 + k + 1]
            k += 1

    # --- SimpleGate
    g = dw[:C2 // 2, :] * dw[C2 // 2:, :]                               # (C2//2, N)

    # --- SCA: per-image global average pool + 1x1 conv (no bias).
    inv_hw = 1.0 / HW
    sca_scale = None
    for b in range(B):
        pooled = jnp.sum(g[:, b * HW:(b + 1) * HW], axis=1,
                         keepdims=True) * inv_hw                        # (C2//2, 1)
        sca = mat_cols(o_wsca, C2 // 2, pooled)                         # (C2//2, 1)
        term = sca * masks[n_taps + b:n_taps + b + 1, :]                # image-b lanes
        sca_scale = term if sca_scale is None else sca_scale + term
    g = g * sca_scale

    # --- conv3 (beta folded) + residual   (dropout1 is identity at rate 0)
    y = inp + mat_cols(o_w3, C, g)

    # --- FFN: norm2 (+ folded affine) + conv4 + SimpleGate + conv5 (gamma folded)
    t = mat_cols(o_w4, Cf, layer_norm(y), bias_off=o_b4)                # (Cf, N)
    t = t[:Cf // 2, :] * t[Cf // 2:, :]
    o_ref[...] = (y + mat_cols(o_w5, C, t)).astype(o_ref.dtype)


def _interp_matrix(out_size, in_size):
    """1-D bilinear interpolation matrix (align_corners=True), shape (out, in)."""
    f32 = jnp.float32
    if in_size == 1:
        return jnp.ones((out_size, 1), dtype=f32)
    if out_size == 1:
        return jnp.zeros((1, in_size), dtype=f32).at[0, 0].set(1.0)
    src = jnp.arange(out_size, dtype=f32) * (in_size - 1) / (out_size - 1)
    lo = jnp.clip(jnp.floor(src).astype(jnp.int32), 0, in_size - 2)
    frac = src - lo.astype(f32)
    rows = jnp.arange(out_size)
    m = jnp.zeros((out_size, in_size), dtype=f32)
    m = m.at[rows, lo].add(1.0 - frac)
    m = m.at[rows, lo + 1].add(frac)
    return m


def _dw_border_masks(H, W):
    """(9, H*W) f32 validity masks for the 3x3 depthwise taps (zero padding)."""
    pos = jnp.arange(H * W, dtype=jnp.int32)
    row, col = pos // W, pos % W
    masks = []
    for dy in (-1, 0, 1):
        for dx in (-1, 0, 1):
            valid = ((row + dy >= 0) & (row + dy < H) &
                     (col + dx >= 0) & (col + dx < W))
            masks.append(valid.astype(jnp.float32))
    return jnp.stack(masks, axis=0)


def levm_block_forward(x, cond, p, eps=1e-6):
    """x: (B, C, H, W) f32, cond: (B, cond_c, Hc, Wc) f32, p: parameter dict."""
    f32 = jnp.float32
    B, C, H, W = x.shape
    _, cond_c, Hc, Wc = cond.shape
    HW, HcWc = H * W, Hc * Wc
    N = B * HW
    C2 = p["w1"].shape[0]
    Cf = p["w4"].shape[0]

    # ---- data-independent setup (shapes only) ----
    A_h = _interp_matrix(H, Hc)
    A_w = _interp_matrix(W, Wc)
    interp_T = jnp.kron(A_h, A_w).T.astype(f32)                 # (HcWc, HW)
    interp_bd = jnp.kron(jnp.eye(B, dtype=f32), interp_T)       # (B*HcWc, N), block-diag
    dwmask = jnp.tile(_dw_border_masks(H, W), (1, B))           # (9, N)
    bsel = jnp.kron(jnp.eye(B, dtype=f32),
                    jnp.ones((1, HW), f32))                     # (B, N) image selectors
    masks = jnp.concatenate([dwmask, bsel], axis=0)             # (9+B, N)

    # ---- fold LayerNorm affines into conv1/conv4, beta/gamma into conv3/conv5 ----
    w1p = (p["w1"] * p["n1w"][None, :]).astype(f32)
    b1 = jnp.sum(p["w1"] * p["n1b"][None, :], axis=1, keepdims=True).astype(f32)
    w4p = (p["w4"] * p["n2w"][None, :]).astype(f32)
    b4 = jnp.sum(p["w4"] * p["n2b"][None, :], axis=1, keepdims=True).astype(f32)
    w3p = (p["beta"][:, None] * p["w3"]).astype(f32)
    w5p = (p["gamma"][:, None] * p["w5"]).astype(f32)
    w2f = p["w2"].reshape(C2, 9).astype(f32)
    col = lambda v: v.reshape(-1, 1).astype(f32)

    # ---- pack every small weight / bias column into one 2-D array ----
    mats = [p["w_ci"].astype(f32), col(p["b_ci"]), w1p, b1, w2f, col(p["b2"]),
            p["w_sca"].astype(f32), w3p, w4p, b4, w5p]
    rows_max = max(m.shape[0] for m in mats)
    offs, off = [], 0
    for m in mats:
        offs.append(off)
        off += m.shape[1]
    P = jnp.zeros((rows_max, off), f32)
    for m, o in zip(mats, offs):
        P = P.at[:m.shape[0], o:o + m.shape[1]].set(m)

    # ---- fold the batch into the lane axis: (B, C, H, W) -> (C, B*HW) ----
    x_f = x.reshape(B, C, HW).transpose(1, 0, 2).reshape(C, N).astype(f32)
    cond_f = cond.reshape(B, cond_c, HcWc).transpose(1, 0, 2) \
                 .reshape(cond_c, B * HcWc).astype(f32)

    flops = int(2 * C * (B * HcWc) * N
                + 2 * N * (C * cond_c + C2 * C + C * (C2 // 2)
                           + Cf * C + C * (Cf // 2))
                + 30 * C2 * N)
    bytes_accessed = int(4 * (x_f.size + cond_f.size + interp_bd.size
                              + masks.size + P.size + C * N))
    cost = pl.CostEstimate(flops=flops, transcendentals=int(2 * N),
                           bytes_accessed=bytes_accessed)

    kernel = functools.partial(
        _levm_kernel, offs=tuple(offs), B=B, C=C, C2=C2, Cf=Cf, H=H, W=W, eps=eps)

    out = pl.pallas_call(
        kernel,
        out_shape=jax.ShapeDtypeStruct((C, N), f32),
        cost_estimate=cost,
    )(x_f, cond_f, interp_bd, masks, P)

    return out.reshape(C, B, HW).transpose(1, 0, 2).reshape(B, C, H, W)


def reference_forward(x, cond, p, eps=1e-6):
    """Plain-JAX NCHW reference of LEVMBlock.forward (drop_out_rate=0)."""
    hp = jax.lax.Precision.HIGHEST
    B, C, H, W = x.shape
    A_h = _interp_matrix(H, cond.shape[2])
    A_w = _interp_matrix(W, cond.shape[3])
    cond_r = jnp.einsum("ia,ncab,jb->ncij", A_h, cond, A_w, precision=hp)
    cond_p = jnp.einsum("oc,ncij->noij", p["w_ci"], cond_r, precision=hp) \
        + p["b_ci"][None, :, None, None]
    x = x + cond_p
    inp = x

    def ln(v, w, b):
        mu = v.mean(axis=1, keepdims=True)
        var = ((v - mu) ** 2).mean(axis=1, keepdims=True)
        return (v - mu) / jnp.sqrt(var + eps) * w[None, :, None, None] + b[None, :, None, None]

    h = ln(x, p["n1w"], p["n1b"])
    h = jnp.einsum("oc,ncij->noij", p["w1"], h, precision=hp)
    hpd = jnp.pad(h, ((0, 0), (0, 0), (1, 1), (1, 1)))
    dw = jnp.zeros_like(h)
    for a in range(3):
        for bb in range(3):
            dw = dw + hpd[:, :, a:a + H, bb:bb + W] * p["w2"][None, :, a, bb, None, None]
    dw = dw + p["b2"][None, :, None, None]
    C2 = dw.shape[1]
    g = dw[:, :C2 // 2] * dw[:, C2 // 2:]
    pooled = g.mean(axis=(2, 3), keepdims=True)
    sca = jnp.einsum("oc,ncij->noij", p["w_sca"], pooled, precision=hp)
    g = g * sca
    u = jnp.einsum("oc,ncij->noij", p["w3"], g, precision=hp)
    y = inp + u * p["beta"][None, :, None, None]
    t = ln(y, p["n2w"], p["n2b"])
    t = jnp.einsum("oc,ncij->noij", p["w4"], t, precision=hp)
    Cf = t.shape[1]
    t = t[:, :Cf // 2] * t[:, Cf // 2:]
    t = jnp.einsum("oc,ncij->noij", p["w5"], t, precision=hp)
    return y + t * p["gamma"][None, :, None, None]


if __name__ == "__main__":
    key = jax.random.PRNGKey(0)
    ks = jax.random.split(key, 20)

    B, C, H, W = 2, 4, 16, 16          # x: (B, c, H, W)
    cond_c, Hc, Wc = 8, 8, 8           # cond: (B, cond_c, Hc, Wc), resized to (H, W)
    DW_Expand, FFN_Expand = 2, 2
    C2, Cf = C * DW_Expand, C * FFN_Expand

    def rnd(k, shape, scale=0.2):
        return scale * jax.random.normal(k, shape, dtype=jnp.float32)

    # Random (non-zero) parameters so every branch of the block is exercised.
    params = dict(
        w_ci=rnd(ks[0], (C, cond_c)), b_ci=rnd(ks[1], (C,)),
        n1w=1.0 + rnd(ks[2], (C,)), n1b=rnd(ks[3], (C,)),
        w1=rnd(ks[4], (C2, C)),
        w2=rnd(ks[5], (C2, 3, 3)), b2=rnd(ks[6], (C2,)),
        w_sca=rnd(ks[7], (C2 // 2, C2 // 2)),
        w3=rnd(ks[8], (C, C2 // 2)),
        n2w=1.0 + rnd(ks[9], (C,)), n2b=rnd(ks[10], (C,)),
        w4=rnd(ks[11], (Cf, C)), w5=rnd(ks[12], (C, Cf // 2)),
        beta=rnd(ks[13], (C,)), gamma=rnd(ks[14], (C,)),
    )
    x = rnd(ks[15], (B, C, H, W), scale=1.0)
    cond = rnd(ks[16], (B, cond_c, Hc, Wc), scale=1.0)

    out = levm_block_forward(x, cond, params)
    out = jax.block_until_ready(out)

    ref = reference_forward(x, cond, params)
    assert out.shape == (B, C, H, W)
    max_err = float(jnp.max(jnp.abs(out - ref)))
    assert jnp.allclose(out, ref, atol=2e-3, rtol=2e-3), f"max abs err {max_err}"
    print("KERNEL_OK")
</pallas_src>

<mosaic_0001>
module attributes {stable_mosaic.version = 11 : i64} {
  func.func @_levm_kernel(%arg0: memref<4x512xf32, #tpu.memory_space<vmem>>, %arg1: memref<8x128xf32, #tpu.memory_space<vmem>>, %arg2: memref<128x512xf32, #tpu.memory_space<vmem>>, %arg3: memref<11x512xf32, #tpu.memory_space<vmem>>, %arg4: memref<8x41xf32, #tpu.memory_space<vmem>>, %arg5: memref<4x512xf32, #tpu.memory_space<vmem>>) attributes {dimension_semantics = [], scalar_prefetch = 0 : i64, scratch_operands = 0 : i64, tpu.core_type = #tpu.core_type<tc>} {
    %c0 = arith.constant 0 : index
    %c0_0 = arith.constant 0 : index
    %0 = vector.load %arg0[%c0, %c0_0] : memref<4x512xf32, #tpu.memory_space<vmem>>, vector<4x512xf32>
    %c0_1 = arith.constant 0 : index
    %c0_2 = arith.constant 0 : index
    %1 = vector.load %arg1[%c0_1, %c0_2] : memref<8x128xf32, #tpu.memory_space<vmem>>, vector<8x128xf32>
    %c0_3 = arith.constant 0 : index
    %c0_4 = arith.constant 0 : index
    %2 = vector.load %arg3[%c0_3, %c0_4] : memref<11x512xf32, #tpu.memory_space<vmem>>, vector<11x512xf32>
    %c0_5 = arith.constant 0 : index
    %c0_6 = arith.constant 0 : index
    %3 = vector.load %arg4[%c0_5, %c0_6] : memref<8x41xf32, #tpu.memory_space<vmem>>, vector<8x41xf32>
    %4 = vector.extract_strided_slice %3 {offsets = [0, 0], sizes = [4, 1], strides = [1, 1]} : vector<8x41xf32> to vector<4x1xf32>
    %5 = vector.extract_strided_slice %1 {offsets = [0, 0], sizes = [1, 128], strides = [1, 1]} : vector<8x128xf32> to vector<1x128xf32>
    %6 = vector.broadcast %4 : vector<4x1xf32> to vector<4x128xf32>
    %7 = vector.broadcast %5 : vector<1x128xf32> to vector<4x128xf32>
    %8 = arith.mulf %6, %7 : vector<4x128xf32>
    %9 = vector.extract_strided_slice %3 {offsets = [0, 1], sizes = [4, 1], strides = [1, 1]} : vector<8x41xf32> to vector<4x1xf32>
    %10 = vector.extract_strided_slice %1 {offsets = [1, 0], sizes = [1, 128], strides = [1, 1]} : vector<8x128xf32> to vector<1x128xf32>
    %11 = vector.broadcast %9 : vector<4x1xf32> to vector<4x128xf32>
    %12 = vector.broadcast %10 : vector<1x128xf32> to vector<4x128xf32>
    %13 = arith.mulf %11, %12 : vector<4x128xf32>
    %14 = arith.addf %8, %13 : vector<4x128xf32>
    %15 = vector.extract_strided_slice %3 {offsets = [0, 2], sizes = [4, 1], strides = [1, 1]} : vector<8x41xf32> to vector<4x1xf32>
    %16 = vector.extract_strided_slice %1 {offsets = [2, 0], sizes = [1, 128], strides = [1, 1]} : vector<8x128xf32> to vector<1x128xf32>
    %17 = vector.broadcast %15 : vector<4x1xf32> to vector<4x128xf32>
    %18 = vector.broadcast %16 : vector<1x128xf32> to vector<4x128xf32>
    %19 = arith.mulf %17, %18 : vector<4x128xf32>
    %20 = arith.addf %14, %19 : vector<4x128xf32>
    %21 = vector.extract_strided_slice %3 {offsets = [0, 3], sizes = [4, 1], strides = [1, 1]} : vector<8x41xf32> to vector<4x1xf32>
    %22 = vector.extract_strided_slice %1 {offsets = [3, 0], sizes = [1, 128], strides = [1, 1]} : vector<8x128xf32> to vector<1x128xf32>
    %23 = vector.broadcast %21 : vector<4x1xf32> to vector<4x128xf32>
    %24 = vector.broadcast %22 : vector<1x128xf32> to vector<4x128xf32>
    %25 = arith.mulf %23, %24 : vector<4x128xf32>
    %26 = arith.addf %20, %25 : vector<4x128xf32>
    %27 = vector.extract_strided_slice %3 {offsets = [0, 4], sizes = [4, 1], strides = [1, 1]} : vector<8x41xf32> to vector<4x1xf32>
    %28 = vector.extract_strided_slice %1 {offsets = [4, 0], sizes = [1, 128], strides = [1, 1]} : vector<8x128xf32> to vector<1x128xf32>
    %29 = vector.broadcast %27 : vector<4x1xf32> to vector<4x128xf32>
    %30 = vector.broadcast %28 : vector<1x128xf32> to vector<4x128xf32>
    %31 = arith.mulf %29, %30 : vector<4x128xf32>
    %32 = arith.addf %26, %31 : vector<4x128xf32>
    %33 = vector.extract_strided_slice %3 {offsets = [0, 5], sizes = [4, 1], strides = [1, 1]} : vector<8x41xf32> to vector<4x1xf32>
    %34 = vector.extract_strided_slice %1 {offsets = [5, 0], sizes = [1, 128], strides = [1, 1]} : vector<8x128xf32> to vector<1x128xf32>
    %35 = vector.broadcast %33 : vector<4x1xf32> to vector<4x128xf32>
    %36 = vector.broadcast %34 : vector<1x128xf32> to vector<4x128xf32>
    %37 = arith.mulf %35, %36 : vector<4x128xf32>
    %38 = arith.addf %32, %37 : vector<4x128xf32>
    %39 = vector.extract_strided_slice %3 {offsets = [0, 6], sizes = [4, 1], strides = [1, 1]} : vector<8x41xf32> to vector<4x1xf32>
    %40 = vector.extract_strided_slice %1 {offsets = [6, 0], sizes = [1, 128], strides = [1, 1]} : vector<8x128xf32> to vector<1x128xf32>
    %41 = vector.broadcast %39 : vector<4x1xf32> to vector<4x128xf32>
    %42 = vector.broadcast %40 : vector<1x128xf32> to vector<4x128xf32>
    %43 = arith.mulf %41, %42 : vector<4x128xf32>
    %44 = arith.addf %38, %43 : vector<4x128xf32>
    %45 = vector.extract_strided_slice %3 {offsets = [0, 7], sizes = [4, 1], strides = [1, 1]} : vector<8x41xf32> to vector<4x1xf32>
    %46 = vector.extract_strided_slice %1 {offsets = [7, 0], sizes = [1, 128], strides = [1, 1]} : vector<8x128xf32> to vector<1x128xf32>
    %47 = vector.broadcast %45 : vector<4x1xf32> to vector<4x128xf32>
    %48 = vector.broadcast %46 : vector<1x128xf32> to vector<4x128xf32>
    %49 = arith.mulf %47, %48 : vector<4x128xf32>
    %50 = arith.addf %44, %49 : vector<4x128xf32>
    %c0_7 = arith.constant 0 : index
    %c0_8 = arith.constant 0 : index
    %51 = vector.load %arg2[%c0_7, %c0_8] : memref<128x512xf32, #tpu.memory_space<vmem>>, vector<128x512xf32>
    %cst = arith.constant dense<0.000000e+00> : vector<4x512xf32>
    %52 = tpu.matmul %50, %51, %cst {dimension_numbers = #tpu.dot_dimension_numbers<[1], [0], [0], [1], [0, 0, 1, 1], [], []>} : vector<4x128xf32>, vector<128x512xf32>, vector<4x512xf32> -> vector<4x512xf32>
    %53 = arith.addf %0, %52 : vector<4x512xf32>
    %54 = vector.extract_strided_slice %3 {offsets = [0, 8], sizes = [4, 1], strides = [1, 1]} : vector<8x41xf32> to vector<4x1xf32>
    %55 = vector.broadcast %54 : vector<4x1xf32> to vector<4x512xf32>
    %56 = arith.addf %53, %55 : vector<4x512xf32>
    %cst_9 = arith.constant dense<0.000000e+00> : vector<512xf32>
    %57 = vector.multi_reduction <add>, %56, %cst_9 [0] : vector<4x512xf32> to vector<512xf32>
    %58 = vector.shape_cast %57 : vector<512xf32> to vector<1x512xf32>
    %cst_10 = arith.constant 4.000000e+00 : f32
    %59 = vector.broadcast %cst_10 : f32 to vector<1x512xf32>
    %60 = arith.divf %58, %59 : vector<1x512xf32>
    %61 = arith.mulf %56, %56 : vector<4x512xf32>
    %cst_11 = arith.constant dense<0.000000e+00> : vector<512xf32>
    %62 = vector.multi_reduction <add>, %61, %cst_11 [0] : vector<4x512xf32> to vector<512xf32>
    %63 = vector.shape_cast %62 : vector<512xf32> to vector<1x512xf32>
    %cst_12 = arith.constant 4.000000e+00 : f32
    %64 = vector.broadcast %cst_12 : f32 to vector<1x512xf32>
    %65 = arith.divf %63, %64 : vector<1x512xf32>
    %66 = arith.mulf %60, %60 : vector<1x512xf32>
    %67 = arith.subf %65, %66 : vector<1x512xf32>
    %68 = vector.broadcast %60 : vector<1x512xf32> to vector<4x512xf32>
    %69 = arith.subf %56, %68 : vector<4x512xf32>
    %cst_13 = arith.constant 9.99999997E-7 : f32
    %70 = vector.broadcast %cst_13 : f32 to vector<1x512xf32>
    %71 = arith.addf %67, %70 : vector<1x512xf32>
    %72 = math.rsqrt %71 : vector<1x512xf32>
    %73 = vector.broadcast %72 : vector<1x512xf32> to vector<4x512xf32>
    %74 = arith.mulf %69, %73 : vector<4x512xf32>
    %75 = vector.extract_strided_slice %3 {offsets = [0, 9], sizes = [8, 1], strides = [1, 1]} : vector<8x41xf32> to vector<8x1xf32>
    %76 = vector.extract_strided_slice %74 {offsets = [0, 0], sizes = [1, 512], strides = [1, 1]} : vector<4x512xf32> to vector<1x512xf32>
    %77 = vector.broadcast %75 : vector<8x1xf32> to vector<8x512xf32>
    %78 = vector.broadcast %76 : vector<1x512xf32> to vector<8x512xf32>
    %79 = arith.mulf %77, %78 : vector<8x512xf32>
    %80 = vector.extract_strided_slice %3 {offsets = [0, 13], sizes = [8, 1], strides = [1, 1]} : vector<8x41xf32> to vector<8x1xf32>
    %81 = vector.broadcast %80 : vector<8x1xf32> to vector<8x512xf32>
    %82 = arith.addf %79, %81 : vector<8x512xf32>
    %83 = vector.extract_strided_slice %3 {offsets = [0, 10], sizes = [8, 1], strides = [1, 1]} : vector<8x41xf32> to vector<8x1xf32>
    %84 = vector.extract_strided_slice %74 {offsets = [1, 0], sizes = [1, 512], strides = [1, 1]} : vector<4x512xf32> to vector<1x512xf32>
    %85 = vector.broadcast %83 : vector<8x1xf32> to vector<8x512xf32>
    %86 = vector.broadcast %84 : vector<1x512xf32> to vector<8x512xf32>
    %87 = arith.mulf %85, %86 : vector<8x512xf32>
    %88 = arith.addf %82, %87 : vector<8x512xf32>
    %89 = vector.extract_strided_slice %3 {offsets = [0, 11], sizes = [8, 1], strides = [1, 1]} : vector<8x41xf32> to vector<8x1xf32>
    %90 = vector.extract_strided_slice %74 {offsets = [2, 0], sizes = [1, 512], strides = [1, 1]} : vector<4x512xf32> to vector<1x512xf32>
    %91 = vector.broadcast %89 : vector<8x1xf32> to vector<8x512xf32>
    %92 = vector.broadcast %90 : vector<1x512xf32> to vector<8x512xf32>
    %93 = arith.mulf %91, %92 : vector<8x512xf32>
    %94 = arith.addf %88, %93 : vector<8x512xf32>
    %95 = vector.extract_strided_slice %3 {offsets = [0, 12], sizes = [8, 1], strides = [1, 1]} : vector<8x41xf32> to vector<8x1xf32>
    %96 = vector.extract_strided_slice %74 {offsets = [3, 0], sizes = [1, 512], strides = [1, 1]} : vector<4x512xf32> to vector<1x512xf32>
    %97 = vector.broadcast %95 : vector<8x1xf32> to vector<8x512xf32>
    %98 = vector.broadcast %96 : vector<1x512xf32> to vector<8x512xf32>
    %99 = arith.mulf %97, %98 : vector<8x512xf32>
    %100 = arith.addf %94, %99 : vector<8x512xf32>
    %101 = vector.extract_strided_slice %3 {offsets = [0, 18], sizes = [8, 1], strides = [1, 1]} : vector<8x41xf32> to vector<8x1xf32>
    %102 = vector.broadcast %101 : vector<8x1xf32> to vector<8x512xf32>
    %103 = arith.mulf %102, %100 : vector<8x512xf32>
    %104 = vector.extract_strided_slice %3 {offsets = [0, 23], sizes = [8, 1], strides = [1, 1]} : vector<8x41xf32> to vector<8x1xf32>
    %105 = vector.broadcast %104 : vector<8x1xf32> to vector<8x512xf32>
    %106 = arith.addf %103, %105 : vector<8x512xf32>
    %c17_i32 = arith.constant 17 : i32
    %107 = tpu.dynamic_rotate %100 by %c17_i32 dim 1 : vector<8x512xf32>, i32 -> vector<8x512xf32>
    %108 = vector.extract_strided_slice %2 {offsets = [0, 0], sizes = [1, 512], strides = [1, 1]} : vector<11x512xf32> to vector<1x512xf32>
    %109 = vector.broadcast %108 : vector<1x512xf32> to vector<8x512xf32>
    %110 = arith.mulf %107, %109 : vector<8x512xf32>
    %111 = vector.extract_strided_slice %3 {offsets = [0, 14], sizes = [8, 1], strides = [1, 1]} : vector<8x41xf32> to vector<8x1xf32>
    %112 = vector.broadcast %111 : vector<8x1xf32> to vector<8x512xf32>
    %113 = arith.mulf %110, %112 : vector<8x512xf32>
    %114 = arith.addf %106, %113 : vector<8x512xf32>
    %c16_i32 = arith.constant 16 : i32
    %115 = tpu.dynamic_rotate %100 by %c16_i32 dim 1 : vector<8x512xf32>, i32 -> vector<8x512xf32>
    %116 = vector.extract_strided_slice %2 {offsets = [1, 0], sizes = [1, 512], strides = [1, 1]} : vector<11x512xf32> to vector<1x512xf32>
    %117 = vector.broadcast %116 : vector<1x512xf32> to vector<8x512xf32>
    %118 = arith.mulf %115, %117 : vector<8x512xf32>
    %119 = vector.extract_strided_slice %3 {offsets = [0, 15], sizes = [8, 1], strides = [1, 1]} : vector<8x41xf32> to vector<8x1xf32>
    %120 = vector.broadcast %119 : vector<8x1xf32> to vector<8x512xf32>
    %121 = arith.mulf %118, %120 : vector<8x512xf32>
    %122 = arith.addf %114, %121 : vector<8x512xf32>
    %c15_i32 = arith.constant 15 : i32
    %123 = tpu.dynamic_rotate %100 by %c15_i32 dim 1 : vector<8x512xf32>, i32 -> vector<8x512xf32>
    %124 = vector.extract_strided_slice %2 {offsets = [2, 0], sizes = [1, 512], strides = [1, 1]} : vector<11x512xf32> to vector<1x512xf32>
    %125 = vector.broadcast %124 : vector<1x512xf32> to vector<8x512xf32>
    %126 = arith.mulf %123, %125 : vector<8x512xf32>
    %127 = vector.extract_strided_slice %3 {offsets = [0, 16], sizes = [8, 1], strides = [1, 1]} : vector<8x41xf32> to vector<8x1xf32>
    %128 = vector.broadcast %127 : vector<8x1xf32> to vector<8x512xf32>
    %129 = arith.mulf %126, %128 : vector<8x512xf32>
    %130 = arith.addf %122, %129 : vector<8x512xf32>
    %c1_i32 = arith.constant 1 : i32
    %131 = tpu.dynamic_rotate %100 by %c1_i32 dim 1 : vector<8x512xf32>, i32 -> vector<8x512xf32>
    %132 = vector.extract_strided_slice %2 {offsets = [3, 0], sizes = [1, 512], strides = [1, 1]} : vector<11x512xf32> to vector<1x512xf32>
    %133 = vector.broadcast %132 : vector<1x512xf32> to vector<8x512xf32>
    %134 = arith.mulf %131, %133 : vector<8x512xf32>
    %135 = vector.extract_strided_slice %3 {offsets = [0, 17], sizes = [8, 1], strides = [1, 1]} : vector<8x41xf32> to vector<8x1xf32>
    %136 = vector.broadcast %135 : vector<8x1xf32> to vector<8x512xf32>
    %137 = arith.mulf %134, %136 : vector<8x512xf32>
    %138 = arith.addf %130, %137 : vector<8x512xf32>
    %c511_i32 = arith.constant 511 : i32
    %139 = tpu.dynamic_rotate %100 by %c511_i32 dim 1 : vector<8x512xf32>, i32 -> vector<8x512xf32>
    %140 = vector.extract_strided_slice %2 {offsets = [5, 0], sizes = [1, 512], strides = [1, 1]} : vector<11x512xf32> to vector<1x512xf32>
    %141 = vector.broadcast %140 : vector<1x512xf32> to vector<8x512xf32>
    %142 = arith.mulf %139, %141 : vector<8x512xf32>
    %143 = vector.extract_strided_slice %3 {offsets = [0, 19], sizes = [8, 1], strides = [1, 1]} : vector<8x41xf32> to vector<8x1xf32>
    %144 = vector.broadcast %143 : vector<8x1xf32> to vector<8x512xf32>
    %145 = arith.mulf %142, %144 : vector<8x512xf32>
    %146 = arith.addf %138, %145 : vector<8x512xf32>
    %c497_i32 = arith.constant 497 : i32
    %147 = tpu.dynamic_rotate %100 by %c497_i32 dim 1 : vector<8x512xf32>, i32 -> vector<8x512xf32>
    %148 = vector.extract_strided_slice %2 {offsets = [6, 0], sizes = [1, 512], strides = [1, 1]} : vector<11x512xf32> to vector<1x512xf32>
    %149 = vector.broadcast %148 : vector<1x512xf32> to vector<8x512xf32>
    %150 = arith.mulf %147, %149 : vector<8x512xf32>
    %151 = vector.extract_strided_slice %3 {offsets = [0, 20], sizes = [8, 1], strides = [1, 1]} : vector<8x41xf32> to vector<8x1xf32>
    %152 = vector.broadcast %151 : vector<8x1xf32> to vector<8x512xf32>
    %153 = arith.mulf %150, %152 : vector<8x512xf32>
    %154 = arith.addf %146, %153 : vector<8x512xf32>
    %c496_i32 = arith.constant 496 : i32
    %155 = tpu.dynamic_rotate %100 by %c496_i32 dim 1 : vector<8x512xf32>, i32 -> vector<8x512xf32>
    %156 = vector.extract_strided_slice %2 {offsets = [7, 0], sizes = [1, 512], strides = [1, 1]} : vector<11x512xf32> to vector<1x512xf32>
    %157 = vector.broadcast %156 : vector<1x512xf32> to vector<8x512xf32>
    %158 = arith.mulf %155, %157 : vector<8x512xf32>
    %159 = vector.extract_strided_slice %3 {offsets = [0, 21], sizes = [8, 1], strides = [1, 1]} : vector<8x41xf32> to vector<8x1xf32>
    %160 = vector.broadcast %159 : vector<8x1xf32> to vector<8x512xf32>
    %161 = arith.mulf %158, %160 : vector<8x512xf32>
    %162 = arith.addf %154, %161 : vector<8x512xf32>
    %c495_i32 = arith.constant 495 : i32
    %163 = tpu.dynamic_rotate %100 by %c495_i32 dim 1 : vector<8x512xf32>, i32 -> vector<8x512xf32>
    %164 = vector.extract_strided_slice %2 {offsets = [8, 0], sizes = [1, 512], strides = [1, 1]} : vector<11x512xf32> to vector<1x512xf32>
    %165 = vector.broadcast %164 : vector<1x512xf32> to vector<8x512xf32>
    %166 = arith.mulf %163, %165 : vector<8x512xf32>
    %167 = vector.extract_strided_slice %3 {offsets = [0, 22], sizes = [8, 1], strides = [1, 1]} : vector<8x41xf32> to vector<8x1xf32>
    %168 = vector.broadcast %167 : vector<8x1xf32> to vector<8x512xf32>
    %169 = arith.mulf %166, %168 : vector<8x512xf32>
    %170 = arith.addf %162, %169 : vector<8x512xf32>
    %171 = vector.extract_strided_slice %170 {offsets = [0, 0], sizes = [4, 512], strides = [1, 1]} : vector<8x512xf32> to vector<4x512xf32>
    %172 = vector.extract_strided_slice %170 {offsets = [4, 0], sizes = [4, 512], strides = [1, 1]} : vector<8x512xf32> to vector<4x512xf32>
    %173 = arith.mulf %171, %172 : vector<4x512xf32>
    %174 = vector.extract_strided_slice %173 {offsets = [0, 0], sizes = [4, 256], strides = [1, 1]} : vector<4x512xf32> to vector<4x256xf32>
    %cst_14 = arith.constant dense<0.000000e+00> : vector<4xf32>
    %175 = vector.multi_reduction <add>, %174, %cst_14 [1] : vector<4x256xf32> to vector<4xf32>
    %176 = vector.shape_cast %175 : vector<4xf32> to vector<4x1xf32>
    %cst_15 = arith.constant 3.906250e-03 : f32
    %177 = vector.broadcast %cst_15 : f32 to vector<4x1xf32>
    %178 = arith.mulf %176, %177 : vector<4x1xf32>
    %179 = vector.extract_strided_slice %3 {offsets = [0, 24], sizes = [4, 1], strides = [1, 1]} : vector<8x41xf32> to vector<4x1xf32>
    %180 = vector.extract_strided_slice %178 {offsets = [0, 0], sizes = [1, 1], strides = [1, 1]} : vector<4x1xf32> to vector<1x1xf32>
    %181 = vector.broadcast %180 : vector<1x1xf32> to vector<4x1xf32>
    %182 = arith.mulf %179, %181 : vector<4x1xf32>
    %183 = vector.extract_strided_slice %3 {offsets = [0, 25], sizes = [4, 1], strides = [1, 1]} : vector<8x41xf32> to vector<4x1xf32>
    %184 = vector.extract_strided_slice %178 {offsets = [1, 0], sizes = [1, 1], strides = [1, 1]} : vector<4x1xf32> to vector<1x1xf32>
    %185 = vector.broadcast %184 : vector<1x1xf32> to vector<4x1xf32>
    %186 = arith.mulf %183, %185 : vector<4x1xf32>
    %187 = arith.addf %182, %186 : vector<4x1xf32>
    %188 = vector.extract_strided_slice %3 {offsets = [0, 26], sizes = [4, 1], strides = [1, 1]} : vector<8x41xf32> to vector<4x1xf32>
    %189 = vector.extract_strided_slice %178 {offsets = [2, 0], sizes = [1, 1], strides = [1, 1]} : vector<4x1xf32> to vector<1x1xf32>
    %190 = vector.broadcast %189 : vector<1x1xf32> to vector<4x1xf32>
    %191 = arith.mulf %188, %190 : vector<4x1xf32>
    %192 = arith.addf %187, %191 : vector<4x1xf32>
    %193 = vector.extract_strided_slice %3 {offsets = [0, 27], sizes = [4, 1], strides = [1, 1]} : vector<8x41xf32> to vector<4x1xf32>
    %194 = vector.extract_strided_slice %178 {offsets = [3, 0], sizes = [1, 1], strides = [1, 1]} : vector<4x1xf32> to vector<1x1xf32>
    %195 = vector.broadcast %194 : vector<1x1xf32> to vector<4x1xf32>
    %196 = arith.mulf %193, %195 : vector<4x1xf32>
    %197 = arith.addf %192, %196 : vector<4x1xf32>
    %198 = vector.extract_strided_slice %2 {offsets = [9, 0], sizes = [1, 512], strides = [1, 1]} : vector<11x512xf32> to vector<1x512xf32>
    %199 = vector.broadcast %197 : vector<4x1xf32> to vector<4x512xf32>
    %200 = vector.broadcast %198 : vector<1x512xf32> to vector<4x512xf32>
    %201 = arith.mulf %199, %200 : vector<4x512xf32>
    %202 = vector.extract_strided_slice %173 {offsets = [0, 256], sizes = [4, 256], strides = [1, 1]} : vector<4x512xf32> to vector<4x256xf32>
    %cst_16 = arith.constant dense<0.000000e+00> : vector<4xf32>
    %203 = vector.multi_reduction <add>, %202, %cst_16 [1] : vector<4x256xf32> to vector<4xf32>
    %204 = vector.shape_cast %203 : vector<4xf32> to vector<4x1xf32>
    %cst_17 = arith.constant 3.906250e-03 : f32
    %205 = vector.broadcast %cst_17 : f32 to vector<4x1xf32>
    %206 = arith.mulf %204, %205 : vector<4x1xf32>
    %207 = vector.extract_strided_slice %3 {offsets = [0, 24], sizes = [4, 1], strides = [1, 1]} : vector<8x41xf32> to vector<4x1xf32>
    %208 = vector.extract_strided_slice %206 {offsets = [0, 0], sizes = [1, 1], strides = [1, 1]} : vector<4x1xf32> to vector<1x1xf32>
    %209 = vector.broadcast %208 : vector<1x1xf32> to vector<4x1xf32>
    %210 = arith.mulf %207, %209 : vector<4x1xf32>
    %211 = vector.extract_strided_slice %3 {offsets = [0, 25], sizes = [4, 1], strides = [1, 1]} : vector<8x41xf32> to vector<4x1xf32>
    %212 = vector.extract_strided_slice %206 {offsets = [1, 0], sizes = [1, 1], strides = [1, 1]} : vector<4x1xf32> to vector<1x1xf32>
    %213 = vector.broadcast %212 : vector<1x1xf32> to vector<4x1xf32>
    %214 = arith.mulf %211, %213 : vector<4x1xf32>
    %215 = arith.addf %210, %214 : vector<4x1xf32>
    %216 = vector.extract_strided_slice %3 {offsets = [0, 26], sizes = [4, 1], strides = [1, 1]} : vector<8x41xf32> to vector<4x1xf32>
    %217 = vector.extract_strided_slice %206 {offsets = [2, 0], sizes = [1, 1], strides = [1, 1]} : vector<4x1xf32> to vector<1x1xf32>
    %218 = vector.broadcast %217 : vector<1x1xf32> to vector<4x1xf32>
    %219 = arith.mulf %216, %218 : vector<4x1xf32>
    %220 = arith.addf %215, %219 : vector<4x1xf32>
    %221 = vector.extract_strided_slice %3 {offsets = [0, 27], sizes = [4, 1], strides = [1, 1]} : vector<8x41xf32> to vector<4x1xf32>
    %222 = vector.extract_strided_slice %206 {offsets = [3, 0], sizes = [1, 1], strides = [1, 1]} : vector<4x1xf32> to vector<1x1xf32>
    %223 = vector.broadcast %222 : vector<1x1xf32> to vector<4x1xf32>
    %224 = arith.mulf %221, %223 : vector<4x1xf32>
    %225 = arith.addf %220, %224 : vector<4x1xf32>
    %226 = vector.extract_strided_slice %2 {offsets = [10, 0], sizes = [1, 512], strides = [1, 1]} : vector<11x512xf32> to vector<1x512xf32>
    %227 = vector.broadcast %225 : vector<4x1xf32> to vector<4x512xf32>
    %228 = vector.broadcast %226 : vector<1x512xf32> to vector<4x512xf32>
    %229 = arith.mulf %227, %228 : vector<4x512xf32>
    %230 = arith.addf %201, %229 : vector<4x512xf32>
    %231 = arith.mulf %173, %230 : vector<4x512xf32>
    %232 = vector.extract_strided_slice %3 {offsets = [0, 28], sizes = [4, 1], strides = [1, 1]} : vector<8x41xf32> to vector<4x1xf32>
    %233 = vector.extract_strided_slice %231 {offsets = [0, 0], sizes = [1, 512], strides = [1, 1]} : vector<4x512xf32> to vector<1x512xf32>
    %234 = vector.broadcast %232 : vector<4x1xf32> to vector<4x512xf32>
    %235 = vector.broadcast %233 : vector<1x512xf32> to vector<4x512xf32>
    %236 = arith.mulf %234, %235 : vector<4x512xf32>
    %237 = vector.extract_strided_slice %3 {offsets = [0, 29], sizes = [4, 1], strides = [1, 1]} : vector<8x41xf32> to vector<4x1xf32>
    %238 = vector.extract_strided_slice %231 {offsets = [1, 0], sizes = [1, 512], strides = [1, 1]} : vector<4x512xf32> to vector<1x512xf32>
    %239 = vector.broadcast %237 : vector<4x1xf32> to vector<4x512xf32>
    %240 = vector.broadcast %238 : vector<1x512xf32> to vector<4x512xf32>
    %241 = arith.mulf %239, %240 : vector<4x512xf32>
    %242 = arith.addf %236, %241 : vector<4x512xf32>
    %243 = vector.extract_strided_slice %3 {offsets = [0, 30], sizes = [4, 1], strides = [1, 1]} : vector<8x41xf32> to vector<4x1xf32>
    %244 = vector.extract_strided_slice %231 {offsets = [2, 0], sizes = [1, 512], strides = [1, 1]} : vector<4x512xf32> to vector<1x512xf32>
    %245 = vector.broadcast %243 : vector<4x1xf32> to vector<4x512xf32>
    %246 = vector.broadcast %244 : vector<1x512xf32> to vector<4x512xf32>
    %247 = arith.mulf %245, %246 : vector<4x512xf32>
    %248 = arith.addf %242, %247 : vector<4x512xf32>
    %249 = vector.extract_strided_slice %3 {offsets = [0, 31], sizes = [4, 1], strides = [1, 1]} : vector<8x41xf32> to vector<4x1xf32>
    %250 = vector.extract_strided_slice %231 {offsets = [3, 0], sizes = [1, 512], strides = [1, 1]} : vector<4x512xf32> to vector<1x512xf32>
    %251 = vector.broadcast %249 : vector<4x1xf32> to vector<4x512xf32>
    %252 = vector.broadcast %250 : vector<1x512xf32> to vector<4x512xf32>
    %253 = arith.mulf %251, %252 : vector<4x512xf32>
    %254 = arith.addf %248, %253 : vector<4x512xf32>
    %255 = arith.addf %56, %254 : vector<4x512xf32>
    %cst_18 = arith.constant dense<0.000000e+00> : vector<512xf32>
    %256 = vector.multi_reduction <add>, %255, %cst_18 [0] : vector<4x512xf32> to vector<512xf32>
    %257 = vector.shape_cast %256 : vector<512xf32> to vector<1x512xf32>
    %cst_19 = arith.constant 4.000000e+00 : f32
    %258 = vector.broadcast %cst_19 : f32 to vector<1x512xf32>
    %259 = arith.divf %257, %258 : vector<1x512xf32>
    %260 = arith.mulf %255, %255 : vector<4x512xf32>
    %cst_20 = arith.constant dense<0.000000e+00> : vector<512xf32>
    %261 = vector.multi_reduction <add>, %260, %cst_20 [0] : vector<4x512xf32> to vector<512xf32>
    %262 = vector.shape_cast %261 : vector<512xf32> to vector<1x512xf32>
    %cst_21 = arith.constant 4.000000e+00 : f32
    %263 = vector.broadcast %cst_21 : f32 to vector<1x512xf32>
    %264 = arith.divf %262, %263 : vector<1x512xf32>
    %265 = arith.mulf %259, %259 : vector<1x512xf32>
    %266 = arith.subf %264, %265 : vector<1x512xf32>
    %267 = vector.broadcast %259 : vector<1x512xf32> to vector<4x512xf32>
    %268 = arith.subf %255, %267 : vector<4x512xf32>
    %cst_22 = arith.constant 9.99999997E-7 : f32
    %269 = vector.broadcast %cst_22 : f32 to vector<1x512xf32>
    %270 = arith.addf %266, %269 : vector<1x512xf32>
    %271 = math.rsqrt %270 : vector<1x512xf32>
    %272 = vector.broadcast %271 : vector<1x512xf32> to vector<4x512xf32>
    %273 = arith.mulf %268, %272 : vector<4x512xf32>
    %274 = vector.extract_strided_slice %3 {offsets = [0, 32], sizes = [8, 1], strides = [1, 1]} : vector<8x41xf32> to vector<8x1xf32>
    %275 = vector.extract_strided_slice %273 {offsets = [0, 0], sizes = [1, 512], strides = [1, 1]} : vector<4x512xf32> to vector<1x512xf32>
    %276 = vector.broadcast %274 : vector<8x1xf32> to vector<8x512xf32>
    %277 = vector.broadcast %275 : vector<1x512xf32> to vector<8x512xf32>
    %278 = arith.mulf %276, %277 : vector<8x512xf32>
    %279 = vector.extract_strided_slice %3 {offsets = [0, 36], sizes = [8, 1], strides = [1, 1]} : vector<8x41xf32> to vector<8x1xf32>
    %280 = vector.broadcast %279 : vector<8x1xf32> to vector<8x512xf32>
    %281 = arith.addf %278, %280 : vector<8x512xf32>
    %282 = vector.extract_strided_slice %3 {offsets = [0, 33], sizes = [8, 1], strides = [1, 1]} : vector<8x41xf32> to vector<8x1xf32>
    %283 = vector.extract_strided_slice %273 {offsets = [1, 0], sizes = [1, 512], strides = [1, 1]} : vector<4x512xf32> to vector<1x512xf32>
    %284 = vector.broadcast %282 : vector<8x1xf32> to vector<8x512xf32>
    %285 = vector.broadcast %283 : vector<1x512xf32> to vector<8x512xf32>
    %286 = arith.mulf %284, %285 : vector<8x512xf32>
    %287 = arith.addf %281, %286 : vector<8x512xf32>
    %288 = vector.extract_strided_slice %3 {offsets = [0, 34], sizes = [8, 1], strides = [1, 1]} : vector<8x41xf32> to vector<8x1xf32>
    %289 = vector.extract_strided_slice %273 {offsets = [2, 0], sizes = [1, 512], strides = [1, 1]} : vector<4x512xf32> to vector<1x512xf32>
    %290 = vector.broadcast %288 : vector<8x1xf32> to vector<8x512xf32>
    %291 = vector.broadcast %289 : vector<1x512xf32> to vector<8x512xf32>
    %292 = arith.mulf %290, %291 : vector<8x512xf32>
    %293 = arith.addf %287, %292 : vector<8x512xf32>
    %294 = vector.extract_strided_slice %3 {offsets = [0, 35], sizes = [8, 1], strides = [1, 1]} : vector<8x41xf32> to vector<8x1xf32>
    %295 = vector.extract_strided_slice %273 {offsets = [3, 0], sizes = [1, 512], strides = [1, 1]} : vector<4x512xf32> to vector<1x512xf32>
    %296 = vector.broadcast %294 : vector<8x1xf32> to vector<8x512xf32>
    %297 = vector.broadcast %295 : vector<1x512xf32> to vector<8x512xf32>
    %298 = arith.mulf %296, %297 : vector<8x512xf32>
    %299 = arith.addf %293, %298 : vector<8x512xf32>
    %300 = vector.extract_strided_slice %299 {offsets = [0, 0], sizes = [4, 512], strides = [1, 1]} : vector<8x512xf32> to vector<4x512xf32>
    %301 = vector.extract_strided_slice %299 {offsets = [4, 0], sizes = [4, 512], strides = [1, 1]} : vector<8x512xf32> to vector<4x512xf32>
    %302 = arith.mulf %300, %301 : vector<4x512xf32>
    %303 = vector.extract_strided_slice %3 {offsets = [0, 37], sizes = [4, 1], strides = [1, 1]} : vector<8x41xf32> to vector<4x1xf32>
    %304 = vector.extract_strided_slice %302 {offsets = [0, 0], sizes = [1, 512], strides = [1, 1]} : vector<4x512xf32> to vector<1x512xf32>
    %305 = vector.broadcast %303 : vector<4x1xf32> to vector<4x512xf32>
    %306 = vector.broadcast %304 : vector<1x512xf32> to vector<4x512xf32>
    %307 = arith.mulf %305, %306 : vector<4x512xf32>
    %308 = vector.extract_strided_slice %3 {offsets = [0, 38], sizes = [4, 1], strides = [1, 1]} : vector<8x41xf32> to vector<4x1xf32>
    %309 = vector.extract_strided_slice %302 {offsets = [1, 0], sizes = [1, 512], strides = [1, 1]} : vector<4x512xf32> to vector<1x512xf32>
    %310 = vector.broadcast %308 : vector<4x1xf32> to vector<4x512xf32>
    %311 = vector.broadcast %309 : vector<1x512xf32> to vector<4x512xf32>
    %312 = arith.mulf %310, %311 : vector<4x512xf32>
    %313 = arith.addf %307, %312 : vector<4x512xf32>
    %314 = vector.extract_strided_slice %3 {offsets = [0, 39], sizes = [4, 1], strides = [1, 1]} : vector<8x41xf32> to vector<4x1xf32>
    %315 = vector.extract_strided_slice %302 {offsets = [2, 0], sizes = [1, 512], strides = [1, 1]} : vector<4x512xf32> to vector<1x512xf32>
    %316 = vector.broadcast %314 : vector<4x1xf32> to vector<4x512xf32>
    %317 = vector.broadcast %315 : vector<1x512xf32> to vector<4x512xf32>
    %318 = arith.mulf %316, %317 : vector<4x512xf32>
    %319 = arith.addf %313, %318 : vector<4x512xf32>
    %320 = vector.extract_strided_slice %3 {offsets = [0, 40], sizes = [4, 1], strides = [1, 1]} : vector<8x41xf32> to vector<4x1xf32>
    %321 = vector.extract_strided_slice %302 {offsets = [3, 0], sizes = [1, 512], strides = [1, 1]} : vector<4x512xf32> to vector<1x512xf32>
    %322 = vector.broadcast %320 : vector<4x1xf32> to vector<4x512xf32>
    %323 = vector.broadcast %321 : vector<1x512xf32> to vector<4x512xf32>
    %324 = arith.mulf %322, %323 : vector<4x512xf32>
    %325 = arith.addf %319, %324 : vector<4x512xf32>
    %326 = arith.addf %255, %325 : vector<4x512xf32>
    %c0_23 = arith.constant 0 : index
    %c0_24 = arith.constant 0 : index
    %327 = vector.load %arg5[%c0_23, %c0_24] : memref<4x512xf32, #tpu.memory_space<vmem>>, vector<4x512xf32>
    tpu.vector_store %arg5[%c0_23, %c0_24], %326 {strides = array<i32>} : memref<4x512xf32, #tpu.memory_space<vmem>>, vector<4x512xf32>,
    return
  }
}

</mosaic_0001>

<bundles_post_ra>
// kernel: tpu_custom_call.1
= control target key start
LH: loop header
LB: loop body
LE: loop exit
PB: predicated region body
PF: predicated region fallthrough
CT: control target
= control target key end

     0   :  { %10 = vsyncpa [#allocation3], 0  ;;  %s2895_s0 = inlined_call_operand.hbm [shape: f32[4,512], index: 0, kind: input, shape index: {}]   ;;  %s2896_s1 = inlined_call_operand.hbm [shape: f32[8,128], index: 1, kind: input, shape index: {}]   ;;  %s2897_s2 = inlined_call_operand.hbm [shape: f32[128,512], index: 2, kind: input, shape index: {}]   ;;  %s2898_s3 = inlined_call_operand.hbm [shape: f32[11,512], index: 3, kind: input, shape index: {}]   ;;  %s2899_s4 = inlined_call_operand.vmem [shape: f32[8,41], index: 4, kind: input, shape index: {}]   ;;  %s2900_s5 = inlined_call_operand.hbm [shape: f32[4,512], index: 5, kind: output, shape index: {}]  }
   0x1   :  { %11 = vsyncpa [#allocation6], 0 }
   0x2   :  { %12 = vsyncpa [#allocation9], 0 }
   0x3   :  { %13 = vsyncpa [#allocation4], 0  ;;  %s2120_s18 = smov [#allocation5]   ;;  %s2121_s20 = smov [#allocation2]  }
   0x4   :  { %s30_s19 = sshll.u32 %s2120_s18, 4  ;;  %s20_s21 = sshll.u32 %s2121_s20, 4  ;;  %s31_s19 = int_to_ptr.vmem [resolvable:$true] %s30_s19  ;;  %s21_s21 = int_to_ptr.vmem [resolvable:$true] %s20_s21 }
   0x5   :  { %s2002_s24 = scalar_lea.hbm %s2896_s1, 128 }
   0x6   :  { %p2003_p0 = scmp.ne.s32.totalorder %s2896_s1, %s2002_s24  ;;  %p2006_p1 = scmp.lt.u32.totalorder %s2002_s24, %s2896_s1 }
   0x8   :  { %p2008_p2 = pnand %p2006_p1, %p2003_p0 }
   0xa   :  { %2011 = shalt.err (!%p2008_p2)
}
   0xb   :  { %s2012_s29 = scalar_lea.vmem %s31_s19, 128  ;;  %p2017_p4 = scmp.lt.s32.totalorder %s31_s19, %s31_s19 }
   0xc   :  { %p2013_p3 = scmp.ne.s32.totalorder %s31_s19, %s2012_s29  ;;  %p2018_p5 = scmp.lt.s32.totalorder %s2012_s29, %s2012_s29 }
   0xe   :  { %p2019_p6 = por %p2018_p5, %p2017_p4 }
  0x10   :  { %p2020_p7 = pnand %p2019_p6, %p2013_p3 }
  0x12   :  { %2023 = shalt.err (!%p2020_p7)
}
  0x13   :  { %33 = dma.hbm_to_vmem [thread:$0]  %s2896_s1, 128, %s31_s19, [#allocation6]  }
  0x14   :  { %s2024_s9 = scalar_lea.hbm %s2895_s0, 256 }
  0x15   :  { %p2025_p8 = scmp.ne.s32.totalorder %s2895_s0, %s2024_s9  ;;  %p2028_p9 = scmp.lt.u32.totalorder %s2024_s9, %s2895_s0 }
  0x17   :  { %p2030_p10 = pnand %p2028_p9, %p2025_p8 }
  0x19   :  { %2033 = shalt.err (!%p2030_p10)
}
  0x1a   :  { %s2034_s14 = scalar_lea.vmem %s21_s21, 256  ;;  %p2039_p12 = scmp.lt.s32.totalorder %s21_s21, %s21_s21 }
  0x1b   :  { %p2035_p11 = scmp.ne.s32.totalorder %s21_s21, %s2034_s14  ;;  %p2040_p13 = scmp.lt.s32.totalorder %s2034_s14, %s2034_s14 }
  0x1d   :  { %p2041_p0 = por %p2040_p13, %p2039_p12 }
  0x1f   :  { %p2042_p1 = pnand %p2041_p0, %p2035_p11 }
  0x21   :  { %2045 = shalt.err (!%p2042_p1)
}
  0x22   :  { %23 = dma.hbm_to_vmem [thread:$0]  %s2895_s0, 256, %s21_s21, [#allocation3]  }
  0x23   :  { %s2122_s16 = smov [#allocation7]   ;;  %s2046_s20 = scalar_lea.hbm %s2897_s2, 8192 }
  0x24   :  { %s39_s17 = sshll.u32 %s2122_s16, 4  ;;  %p2047_p2 = scmp.ne.s32.totalorder %s2897_s2, %s2046_s20  ;;  %s40_s17 = int_to_ptr.vmem [resolvable:$true] %s39_s17 }
  0x25   :  { %p2050_p3 = scmp.lt.u32.totalorder %s2046_s20, %s2897_s2 }
  0x27   :  { %p2052_p4 = pnand %p2050_p3, %p2047_p2 }
  0x29   :  { %2055 = shalt.err (!%p2052_p4)
}
  0x2a   :  { %s2056_s26 = scalar_lea.vmem %s40_s17, 8192  ;;  %p2061_p6 = scmp.lt.s32.totalorder %s40_s17, %s40_s17 }
  0x2b   :  { %p2057_p5 = scmp.ne.s32.totalorder %s40_s17, %s2056_s26  ;;  %p2062_p7 = scmp.lt.s32.totalorder %s2056_s26, %s2056_s26 }
  0x2d   :  { %p2063_p8 = por %p2062_p7, %p2061_p6 }
  0x2f   :  { %p2064_p9 = pnand %p2063_p8, %p2057_p5 }
  0x31   :  { %2067 = shalt.err (!%p2064_p9)
}
  0x32   :  { %s2123_s0 = smov 512   ;;  %s2124_s21 = smov 32  }
  0x33   :  { %45 = dma.hbm_to_vmem [thread:$0]  %s2897_s2, 8192, %s40_s17, [#allocation6], %s2123_s0, %s2123_s0, %s2124_s21  }
  0x34   :  { %s2125_s29 = smov [#allocation8]   ;;  %s2068_s8 = scalar_lea.hbm %s2898_s3, 1024 }
  0x35   :  { %s51_s30 = sshll.u32 %s2125_s29, 4  ;;  %p2069_p10 = scmp.ne.s32.totalorder %s2898_s3, %s2068_s8  ;;  %s52_s30 = int_to_ptr.vmem [resolvable:$true] %s51_s30 }
  0x36   :  { %p2072_p11 = scmp.lt.u32.totalorder %s2068_s8, %s2898_s3 }
  0x38   :  { %p2074_p12 = pnand %p2072_p11, %p2069_p10 }
  0x3a   :  { %2077 = shalt.err (!%p2074_p12)
}
  0x3b   :  { %s2078_s13 = scalar_lea.vmem %s52_s30, 1024  ;;  %p2083_p0 = scmp.lt.s32.totalorder %s52_s30, %s52_s30 }
  0x3c   :  { %p2079_p13 = scmp.ne.s32.totalorder %s52_s30, %s2078_s13  ;;  %p2084_p1 = scmp.lt.s32.totalorder %s2078_s13, %s2078_s13 }
  0x3e   :  { %p2085_p2 = por %p2084_p1, %p2083_p0 }
  0x40   :  { %p2086_p3 = pnand %p2085_p2, %p2079_p13 }
  0x42   :  { %2089 = shalt.err (!%p2086_p3)
}
  0x43   :  { %57 = dma.hbm_to_vmem [thread:$0]  %s2898_s3, 1024, %s52_s30, [#allocation9], %s2123_s0, %s2123_s0, %s2124_s21  }
  0x44   :  { %2112 = dma.done.wait [#allocation3], 256  }
  0x45   :  { %2113 = vsyncadd [#allocation3], 4294967040 }
  0x46   :  { %2114 = dma.done.wait [#allocation6], 8320  }
  0x47   :  { %2115 = vsyncadd [#allocation6], 4294958976 }
  0x48   :  { %2116 = dma.done.wait [#allocation9], 1024  }
  0x49   :  { %2117 = vsyncadd [#allocation9], 4294966272  ;;  %v2126_v0 = vmov 2   ;;  %v2127_v1 = vmov 0   ;;  %v2258_v2 = vld [vmem:[%s2899_s4] sm:$0xff]  ;;  %v167_v6 = vld [vmem:[#allocation7 + $0x18] sm:$0xff] }
  0x4a   :  { %1947 = vset.pattern.permute.xlu1 %v2126_v0  ;;  %1945 = vset.pattern.permute.xlu0 %v2127_v1  ;;  %v165_v3 = vld [vmem:[#allocation7 + $0x8] sm:$0xff]  ;;  %v171_v7 = vld [vmem:[#allocation7 + $0x38] sm:$0xff]  ;;  %v164_v8 = vld [vmem:[#allocation7] sm:$0xff]  ;;  %v2128_v21 = vmov 3   ;;  %v2129_v22 = vmov 1   ;;  %v2130_v38 = vmov 4  }
  0x4b   :  { %v169_v4 = vld [vmem:[#allocation7 + $0x28] sm:$0xff]  ;;  %105 = vperm.xlu1 %1947, %v2258_v2   ;;  %86 = vperm.xlu0 %1945, %v2258_v2   ;;  %v1856_v9 = vpack.c.bf16 %v171_v7, %v167_v6  ;;  %v168_v10 = vld [vmem:[#allocation7 + $0x20] sm:$0xff]  ;;  %v166_v11 = vld [vmem:[#allocation7 + $0x10] sm:$0xff]  ;;  %v2131_v39 = vmov 5   ;;  %v2132_v54 = vmov 6   ;;  %v2133_v7 = vmov 7  }
  0x4c   :  { %v1824_v5 = vpack.c.bf16 %v169_v4, %v165_v3  ;;  %v170_v12 = vld [vmem:[#allocation7 + $0x30] sm:$0xff]  ;;  %v1826_v13 = vpack.c.bf16 %v168_v10, %v164_v8  ;;  %v173_v15 = vld [vmem:[#allocation7 + $0x48] sm:$0xff]  ;;  %v175_v17 = vld [vmem:[#allocation7 + $0x58] sm:$0xff]  ;;  %vm399_vm0 = vcmask 1043456   ;;  %s2152_s3 = smov 17   ;;  %s2153_s16 = smov 16  }
  0x4d   :  { %v1858_v14 = vpack.c.bf16 %v170_v12, %v166_v11  ;;  %v177_v16 = vld [vmem:[#allocation7 + $0x68] sm:$0xff]  ;;  %1857 = vmatprep.subr.bf16.mxu1 %v1856_v9  ;;  %v179_v19 = vld [vmem:[#allocation7 + $0x78] sm:$0xff]  ;;  %v172_v20 = vld [vmem:[#allocation7 + $0x40] sm:$0xff]  ;;  %s2154_s17 = smov 15   ;;  %s2155_s18 = smov 1  }
  0x4e   :  { %1825 = vmatprep.subr.bf16.mxu0 %v1824_v5  ;;  %v1828_v18 = vpack.c.bf16 %v177_v16, %v173_v15  ;;  %v1860_v23 = vpack.c.bf16 %v179_v19, %v175_v17  ;;  %v176_v24 = vld [vmem:[#allocation7 + $0x60] sm:$0xff]  ;;  %v174_v25 = vld [vmem:[#allocation7 + $0x50] sm:$0xff]  ;;  %v181_v27 = vld [vmem:[#allocation7 + $0x88] sm:$0xff]  ;;  %s2156_s19 = smov 127   ;;  %s2157_s20 = smov 113  }
  0x4f   :  { %1948 = vset.pattern.permute.xlu1 %v2128_v21  ;;  %1946 = vset.pattern.permute.xlu0 %v2129_v22  ;;  %v178_v26 = vld [vmem:[#allocation7 + $0x70] sm:$0xff]  ;;  %v185_v28 = vld [vmem:[#allocation7 + $0xa8] sm:$0xff]  ;;  %v183_v29 = vld [vmem:[#allocation7 + $0x98] sm:$0xff]  ;;  %v1830_v31 = vpack.c.bf16 %v176_v24, %v172_v20  ;;  %v2134_v21 = vmov 0.0   ;;  %s2158_s22 = smov 112   ;;  %s2159_s23 = smov 111  }
  0x50   :  { %115 = vperm.xlu1 %1948, %v2258_v2   ;;  %95 = vperm.xlu0 %1946, %v2258_v2   ;;  %v187_v30 = vld [vmem:[#allocation7 + $0xb8] sm:$0xff]  ;;  %v1862_v32 = vpack.c.bf16 %v178_v26, %v174_v25  ;;  %v1832_v33 = vpack.c.bf16 %v185_v28, %v181_v27  ;;  %v180_v35 = vld [vmem:[#allocation7 + $0x80] sm:$0xff]  ;;  %v182_v37 = vld [vmem:[#allocation7 + $0x90] sm:$0xff]  ;;  %s2162_s26 = smov 125   ;;  %s2176_s0 = smov [#allocation10]  }
  0x51   :  { %1827 = vmatpush1.bf16.msra.mxu0 %v1826_v13  ;;  %1859 = vmatpush1.bf16.msra.mxu1 %v1858_v14  ;;  %v1864_v34 = vpack.c.bf16 %v187_v30, %v183_v29  ;;  %v184_v36 = vld [vmem:[#allocation7 + $0xa0] sm:$0xff]  ;;  %v186_v40 = vld [vmem:[#allocation7 + $0xb0] sm:$0xff]  ;;  %v189_v41 = vld [vmem:[#allocation7 + $0xc8] sm:$0xff]  ;;  %s1813_s21 = sshll.u32 %s2176_s0, 4  ;;  %s1814_s21 = int_to_ptr.vmem [resolvable:$true] %s1813_s21 }
  0x52   :  { %1829 = vmatprep.subr.bf16.mxu0 %v1828_v18  ;;  %1861 = vmatprep.subr.bf16.mxu1 %v1860_v23  ;;  %v193_v42 = vld [vmem:[#allocation7 + $0xe8] sm:$0xff]  ;;  %v191_v43 = vld [vmem:[#allocation7 + $0xd8] sm:$0xff]  ;;  %v1834_v45 = vpack.c.bf16 %v184_v36, %v180_v35  ;;  %v1866_v46 = vpack.c.bf16 %v186_v40, %v182_v37  ;;  %v188_v48 = vld [vmem:[#allocation7 + $0xc0] sm:$0xff]  ;;  %s2090_s27 = scalar_lea.vmem %s1814_s21, 256  ;;  %p2095_p5 = scmp.lt.s32.totalorder %s1814_s21, %s1814_s21 }
  0x53   :  { %v195_v44 = vld [vmem:[#allocation7 + $0xf8] sm:$0xff]  ;;  %v1836_v47 = vpack.c.bf16 %v193_v42, %v189_v41  ;;  %v192_v49 = vld [vmem:[#allocation7 + $0xe0] sm:$0xff]  ;;  %v190_v51 = vld [vmem:[#allocation7 + $0xd0] sm:$0xff]  ;;  %292 = vmatprep.mubr.f32.mxu0 %v2134_v21  ;;  %363 = vmatprep.mubr.f32.mxu1 %v2134_v21  ;;  %p2091_p4 = scmp.ne.s32.totalorder %s1814_s21, %s2090_s27  ;;  %p2096_p6 = scmp.lt.s32.totalorder %s2090_s27, %s2090_s27 }
  0x54   :  { %1949 = vset.pattern.permute.xlu1 %v2130_v38  ;;  %1950 = vset.pattern.permute.xlu0 %v2131_v39  ;;  %v1868_v50 = vpack.c.bf16 %v195_v44, %v191_v43  ;;  %v194_v52 = vld [vmem:[#allocation7 + $0xf0] sm:$0xff]  ;;  %v197_v53 = vld [vmem:[#allocation7 + $0x108] sm:$0xff]  ;;  %v199_v56 = vld [vmem:[#allocation7 + $0x118] sm:$0xff]  ;;  %v1838_v58 = vpack.c.bf16 %v192_v49, %v188_v48  ;;  %v2137_v44 = vmov 10   ;;  %v2140_v48 = vmov 18  }
  0x55   :  { %125 = vperm.xlu1 %1949, %v2258_v2   ;;  %135 = vperm.xlu0 %1950, %v2258_v2   ;;  %v201_v55 = vld [vmem:[#allocation7 + $0x128] sm:$0xff]  ;;  %v203_v57 = vld [vmem:[#allocation7 + $0x138] sm:$0xff]  ;;  %v1870_v59 = vpack.c.bf16 %v194_v52, %v190_v51  ;;  %v196_v60 = vld [vmem:[#allocation7 + $0x100] sm:$0xff]  ;;  %v2141_v49 = vmov 12   ;;  %v89_v51 = vlaneseq  ;;  %p2097_p7 = por %p2096_p6, %p2095_p5 }
  0x56   :  { %1831 = vmatpush1.bf16.msra.mxu0 %v1830_v31  ;;  %1863 = vmatpush1.bf16.msra.mxu1 %v1862_v32  ;;  %v200_v61 = vld [vmem:[#allocation7 + $0x120] sm:$0xff]  ;;  %v198_v62 = vld [vmem:[#allocation7 + $0x110] sm:$0xff]  ;;  %v1840_v63 = vpack.c.bf16 %v201_v55, %v197_v53  ;;  %v1872_v0 = vpack.c.bf16 %v203_v57, %v199_v56  ;;  %v205_v3 = vld [vmem:[#allocation7 + $0x148] sm:$0xff] }
  0x57   :  { %1833 = vmatprep.subr.bf16.mxu0 %v1832_v33  ;;  %1865 = vmatprep.subr.bf16.mxu1 %v1864_v34  ;;  %v202_v1 = vld [vmem:[#allocation7 + $0x130] sm:$0xff]  ;;  %v209_v4 = vld [vmem:[#allocation7 + $0x168] sm:$0xff]  ;;  %v207_v5 = vld [vmem:[#allocation7 + $0x158] sm:$0xff]  ;;  %v1842_v8 = vpack.c.bf16 %v200_v61, %v196_v60  ;;  %v2135_v33 = vmov 8   ;;  %v2136_v34 = vmov 9   ;;  %v2277_v52 = vshrl.u32 %v89_v51, 7  ;;  %p2098_p8 = pnand %p2097_p7, %p2091_p4 }
  0x58   :  { %v211_v6 = vld [vmem:[#allocation7 + $0x178] sm:$0xff]  ;;  %v1874_v9 = vpack.c.bf16 %v202_v1, %v198_v62  ;;  %v1844_v10 = vpack.c.bf16 %v209_v4, %v205_v3  ;;  %v204_v11 = vld [vmem:[#allocation7 + $0x140] sm:$0xff]  ;;  %v206_v13 = vld [vmem:[#allocation7 + $0x150] sm:$0xff] }
  0x59   :  { %1951 = vset.pattern.permute.xlu1 %v2132_v54  ;;  %v208_v12 = vld [vmem:[#allocation7 + $0x160] sm:$0xff]  ;;  %v1876_v14 = vpack.c.bf16 %v211_v6, %v207_v5  ;;  %v210_v15 = vld [vmem:[#allocation7 + $0x170] sm:$0xff]  ;;  %v213_v16 = vld [vmem:[#allocation7 + $0x188] sm:$0xff]  ;;  %1953 = vset.pattern.permute.xlu0 %v2135_v33  ;;  %v2280_v53 = vsub.s32 0, %v2277_v52  ;;  %v2283_v54 = vsub.s32 1, %v2277_v52  ;;  %v2286_v55 = vsub.s32 2, %v2277_v52 }
  0x5a   :  { %145 = vperm.xlu1 %1951, %v2258_v2   ;;  %1835 = vmatpush1.bf16.msra.mxu0 %v1834_v45  ;;  %v217_v17 = vld [vmem:[#allocation7 + $0x1a8] sm:$0xff]  ;;  %v215_v18 = vld [vmem:[#allocation7 + $0x198] sm:$0xff]  ;;  %v1846_v20 = vpack.c.bf16 %v208_v12, %v204_v11  ;;  %v1878_v22 = vpack.c.bf16 %v210_v15, %v206_v13  ;;  %v212_v24 = vld [vmem:[#allocation7 + $0x180] sm:$0xff]  ;;  %v2290_v60 = vsub.s32 3, %v2277_v52  ;;  %v2294_v62 = vsub.s32 4, %v2277_v52 }
  0x5b   :  { %1867 = vmatpush1.bf16.msra.mxu1 %v1866_v46  ;;  %1837 = vmatprep.subr.bf16.mxu0 %v1836_v47  ;;  %v219_v19 = vld [vmem:[#allocation7 + $0x1b8] sm:$0xff]  ;;  %v1848_v23 = vpack.c.bf16 %v217_v17, %v213_v16  ;;  %v216_v25 = vld [vmem:[#allocation7 + $0x1a0] sm:$0xff]  ;;  %v214_v26 = vld [vmem:[#allocation7 + $0x190] sm:$0xff]  ;;  %v2138_v46 = vmov 13   ;;  %v2139_v47 = vmov 11   ;;  %v2298_v3 = vsub.s32 5, %v2277_v52 }
  0x5c   :  { %1869 = vmatprep.subr.bf16.mxu1 %v1868_v50  ;;  %v1880_v27 = vpack.c.bf16 %v219_v19, %v215_v18  ;;  %v218_v28 = vld [vmem:[#allocation7 + $0x1b0] sm:$0xff]  ;;  %v221_v29 = vld [vmem:[#allocation7 + $0x1c8] sm:$0xff]  ;;  %v223_v31 = vld [vmem:[#allocation7 + $0x1d8] sm:$0xff]  ;;  %v1850_v35 = vpack.c.bf16 %v216_v25, %v212_v24  ;;  %381 = vperm.xlu0 %1953, %v2258_v2   ;;  %v2142_v50 = vmov 23   ;;  %v2304_v11 = vsub.s32 6, %v2277_v52 }
  0x5d   :  { %v225_v30 = vld [vmem:[#allocation7 + $0x1e8] sm:$0xff]  ;;  %v227_v32 = vld [vmem:[#allocation7 + $0x1f8] sm:$0xff]  ;;  %v1882_v36 = vpack.c.bf16 %v218_v28, %v214_v26  ;;  %v220_v38 = vld [vmem:[#allocation7 + $0x1c0] sm:$0xff]  ;;  %v2146_v33 = vmov 19  }
  0x5e   :  { %1952 = vset.pattern.permute.xlu1 %v2133_v7  ;;  %1839 = vmatpush1.bf16.msra.mxu0 %v1838_v58  ;;  %v1852_v37 = vpack.c.bf16 %v225_v30, %v221_v29  ;;  %v224_v39 = vld [vmem:[#allocation7 + $0x1e0] sm:$0xff]  ;;  %v1884_v40 = vpack.c.bf16 %v227_v32, %v223_v31  ;;  %v222_v41 = vld [vmem:[#allocation7 + $0x1d0] sm:$0xff]  ;;  %v74_v58 = vld [vmem:[#allocation5] sm:$0xff]  ;;  %v2143_v30 = vmov 15   ;;  %v2144_v31 = vmov 16  }
  0x5f   :  { %155 = vperm.xlu1 %1952, %v2258_v2   ;;  %1871 = vmatpush1.bf16.msra.mxu1 %v1870_v59  ;;  %v226_v42 = vld [vmem:[#allocation7 + $0x1f0] sm:$0xff]  ;;  %v1854_v43 = vpack.c.bf16 %v224_v39, %v220_v38  ;;  %v92_v59 = vrot.slane %v74_v58, %v2280_v53  ;;  %v101_v61 = vrot.slane %v74_v58, %v2283_v54  ;;  %v2145_v32 = vmov 17  }
  0x60   :  { %1841 = vmatprep.subr.bf16.mxu0 %v1840_v63  ;;  %1873 = vmatprep.subr.bf16.mxu1 %v1872_v0  ;;  %v1886_v45 = vpack.c.bf16 %v226_v42, %v222_v41  ;;  %v111_v63 = vrot.slane %v74_v58, %v2286_v55  ;;  %v121_v5 = vrot.slane %v74_v58, %v2290_v60  ;;  %v2151_v38 = vmov 839922192  }
  0x61   :  { %1956 = vset.pattern.permute.xlu0 %v2137_v44  ;;  %v131_v7 = vrot.slane %v74_v58, %v2294_v62  ;;  %v151_v19 = vrot.slane %v74_v58, %v2304_v11  ;;  %v384_v39 = vunpack.c.l.s4 %v2151_v38 }
  0x62   :  { %1843 = vmatpush1.bf16.msra.mxu0 %v1842_v8  ;;  %564 = vperm.xlu0 %1956, %v2258_v2  }
  0x63   :  { %1875 = vmatpush1.bf16.msra.mxu1 %v1874_v9  ;;  %1845 = vmatprep.subr.bf16.mxu0 %v1844_v10  ;;  %v141_v10 = vrot.slane %v74_v58, %v2298_v3 }
  0x64   :  { %1877 = vmatprep.subr.bf16.mxu1 %v1876_v14  ;;  %1954 = vset.pattern.permute.xlu1 %v2136_v34  ;;  %v2147_v34 = vmov 20  }
  0x65   :  { %510 = vperm.xlu1 %1954, %v2258_v2  }
  0x66   :  { %1847 = vmatpush1.bf16.msra.mxu0 %v1846_v20  ;;  %1959 = vset.pattern.permute.xlu0 %v2140_v48  ;;  %v2308_v20 = vsub.s32 7, %v2277_v52 }
  0x67   :  { %1879 = vmatpush1.bf16.msra.mxu1 %v1878_v22  ;;  %1849 = vmatprep.subr.bf16.mxu0 %v1848_v23 }
  0x68   :  { %1881 = vmatprep.subr.bf16.mxu1 %v1880_v27  ;;  %708 = vperm.xlu0 %1959, %v2258_v2   ;;  %v161_v25 = vrot.slane %v74_v58, %v2308_v20 }
  0x69   :  { %1955 = vset.pattern.permute.xlu1 %v2138_v46 }
  0x6a   :  { %1851 = vmatpush1.bf16.msra.mxu0 %v1850_v35  ;;  %556 = vperm.xlu1 %1955, %v2258_v2   ;;  %v2148_v35 = vmov 21  }
  0x6b   :  { %1883 = vmatpush1.bf16.msra.mxu1 %v1882_v36  ;;  %1853 = vmatprep.subr.bf16.mxu0 %v1852_v37  ;;  %v2149_v36 = vmov 14   ;;  %v2150_v37 = vmov 22  }
  0x6c   :  { %1885 = vmatprep.subr.bf16.mxu1 %v1884_v40  ;;  %1962 = vset.pattern.permute.xlu0 %v2143_v30  ;;  %v385_v40 = vunpack.c.0.s8 %v384_v39 }
  0x6d   :  { %804 = vperm.xlu0 %1962, %v2258_v2  }
  0x6e   :  { %1855 = vmatpush1.bf16.msra.mxu0 %v1854_v43  ;;  %1957 = vset.pattern.permute.xlu1 %v2139_v47  ;;  %v388_v41 = vsub.s32 %v385_v40, %v2277_v52  ;;  %v73_v47 = vld [vmem:[#allocation2 + $0x8] sm:$0xff] }
  0x6f   :  { %1887 = vmatpush1.bf16.msra.mxu1 %v1886_v45  ;;  %612 = vperm.xlu1 %1957, %v2258_v2   ;;  %v72_v45 = vld [vmem:[#allocation2] sm:$0xff] }
  0x71   :  { %1963 = vset.pattern.permute.xlu0 %v2144_v31 }
  0x72   :  { %849 = vperm.xlu0 %1963, %v2258_v2  }
  0x73   :  { %1958 = vset.pattern.permute.xlu1 %v2141_v49 }
  0x74   :  { %660 = vperm.xlu1 %1958, %v2258_v2  }
  0x76   :  { %1964 = vset.pattern.permute.xlu0 %v2145_v32 }
  0x77   :  { %894 = vperm.xlu0 %1964, %v2258_v2  }
  0x78   :  { %1960 = vset.pattern.permute.xlu1 %v2142_v50 }
  0x79   :  { %716 = vperm.xlu1 %1960, %v2258_v2  }
  0x7b   :  { %1965 = vset.pattern.permute.xlu0 %v2146_v33 }
  0x7c   :  { %939 = vperm.xlu0 %1965, %v2258_v2  }
  0x7d   :  { %1961 = vset.pattern.permute.xlu1 %v2149_v36 }
  0x7e   :  { %759 = vperm.xlu1 %1961, %v2258_v2  }
  0x80   :  { %1966 = vset.pattern.permute.xlu0 %v2147_v34 }
  0x81   :  { %984 = vperm.xlu0 %1966, %v2258_v2  }
  0x85   :  { %1967 = vset.pattern.permute.xlu0 %v2148_v35 }
  0x86   :  { %1029 = vperm.xlu0 %1967, %v2258_v2  }
  0x8a   :  { %1968 = vset.pattern.permute.xlu0 %v2150_v37 }
  0x8b   :  { %1074 = vperm.xlu0 %1968, %v2258_v2  }
  0xca   :  { %v106_v56 = vpop.permute.xlu1 %105  ;;  %v87_v57 = vpop.permute.xlu0 %86 }
  0xcb   :  { %v93_v4 = vmul.f32 %v92_v59, %v87_v57  ;;  %v112_v8 = vmul.f32 %v111_v63, %v106_v56 }
  0xcf   :  { %v116_v0 = vpop.permute.xlu1 %115  ;;  %v96_v1 = vpop.permute.xlu0 %95 }
  0xd0   :  { %v102_v6 = vmul.f32 %v101_v61, %v96_v1  ;;  %v122_v12 = vmul.f32 %v121_v5, %v116_v0 }
  0xd2   :  { %v103_v9 = vadd.f32 %v102_v6, %v93_v4 }
  0xd4   :  { %v113_v13 = vadd.f32 %v112_v8, %v103_v9  ;;  %v126_v14 = vpop.permute.xlu1 %125  ;;  %v136_v15 = vpop.permute.xlu0 %135 }
  0xd5   :  { %v132_v16 = vmul.f32 %v131_v7, %v126_v14  ;;  %v142_v18 = vmul.f32 %v141_v10, %v136_v15 }
  0xd6   :  { %v123_v17 = vadd.f32 %v122_v12, %v113_v13 }
  0xd8   :  { %v133_v21 = vadd.f32 %v132_v16, %v123_v17 }
  0xd9   :  { %v146_v22 = vpop.permute.xlu1 %145 }
  0xda   :  { %v143_v23 = vadd.f32 %v142_v18, %v133_v21  ;;  %v152_v24 = vmul.f32 %v151_v19, %v146_v22 }
  0xdb   :  { %v382_v42 = vpop.permute.xlu0 %381 }
  0xdc   :  { %v153_v27 = vadd.f32 %v152_v24, %v143_v23  ;;  %v389_v56 = vrot.slane %v382_v42, %v388_v41 }
  0xde   :  { %v156_v26 = vpop.permute.xlu1 %155 }
  0xdf   :  { %v162_v28 = vmul.f32 %v161_v25, %v156_v26 }
  0xe1   :  { %v163_v29 = vadd.f32 %v162_v28, %v153_v27 }
  0xe3   :  { %293 = vmatmul.mubr.f32.vlgmr.msra.gmra.mrb[0].mxu0 %v163_v29  ;;  %364 = vmatmul.mubr.f32.vlgmr.msra.gmra.mrb[0].mxu1 %v163_v29 }
 0x1b6   :  { %v294_v43 = vpop.f32.mrb[0].mxu0  ;;  %v365_v44 = vpop.f32.mrb[0].mxu1 }
 0x1b7   :  { %v296_v46 = vpop.f32.mrb[1].mxu0  ;;  %v367_v48 = vpop.f32.mrb[1].mxu1 }
 0x1b8   :  { %v374_v49 = vcombine.low %v294_v43, %v296_v46  ;;  %v375_v50 = vcombine.low %v365_v44, %v367_v48 }
 0x1ba   :  { %v378_v57 = vadd.f32 %v374_v49, %v72_v45  ;;  %v379_v58 = vadd.f32 %v375_v50, %v73_v47 }
 0x1bc   :  { %v2320_v59 = vadd.f32 %v389_v56, %v378_v57  ;;  %v2322_v2 = vadd.f32 %v389_v56, %v379_v58 }
 0x1be   :  { %v395_v52 = vcombine.high %v2320_v59, %v2320_v59  ;;  %v396_v61 = vcombine.high %v2322_v2, %v2322_v2  ;;  %v400_v63 = vsel %vm399_vm0, %v2320_v59, 0.0  ;;  %v414_v0 = vsel %vm399_vm0, %v2322_v2, 0.0 }
 0x1bf   :  { %v401_v1 = vrot.slane %v400_v63, 4  ;;  %v415_v4 = vrot.slane %v414_v0, 4  ;;  %v433_v5 = vmul.f32 %v2320_v59, %v2320_v59  ;;  %v434_v6 = vmul.f32 %v2322_v2, %v2322_v2 }
 0x1c0   :  { %v407_v7 = vsel %vm399_vm0, %v395_v52, 0.0  ;;  %v421_v8 = vsel %vm399_vm0, %v396_v61, 0.0 }
 0x1c1   :  { %v402_v9 = vadd.f32 %v401_v1, %v400_v63  ;;  %v408_v10 = vrot.slane %v407_v7, 4  ;;  %v416_v12 = vadd.f32 %v415_v4, %v414_v0  ;;  %v422_v13 = vrot.slane %v421_v8, 4 }
 0x1c2   :  { %v437_v14 = vcombine.high %v433_v5, %v433_v5  ;;  %v438_v15 = vcombine.high %v434_v6, %v434_v6  ;;  %v441_v16 = vsel %vm399_vm0, %v433_v5, 0.0  ;;  %v455_v17 = vsel %vm399_vm0, %v434_v6, 0.0 }
 0x1c3   :  { %v403_v18 = vrot.slane %v402_v9, 2  ;;  %v409_v19 = vadd.f32 %v408_v10, %v407_v7  ;;  %v417_v21 = vrot.slane %v416_v12, 2  ;;  %v423_v22 = vadd.f32 %v422_v13, %v421_v8 }
 0x1c4   :  { %v442_v23 = vrot.slane %v441_v16, 4  ;;  %v448_v24 = vsel %vm399_vm0, %v437_v14, 0.0  ;;  %v456_v25 = vrot.slane %v455_v17, 4  ;;  %v462_v26 = vsel %vm399_vm0, %v438_v15, 0.0 }
 0x1c5   :  { %v404_v27 = vadd.f32 %v403_v18, %v402_v9  ;;  %v410_v28 = vrot.slane %v409_v19, 2  ;;  %v418_v29 = vadd.f32 %v417_v21, %v416_v12  ;;  %v424_v30 = vrot.slane %v423_v22, 2 }
 0x1c6   :  { %v443_v31 = vadd.f32 %v442_v23, %v441_v16  ;;  %v449_v32 = vrot.slane %v448_v24, 4  ;;  %v457_v33 = vadd.f32 %v456_v25, %v455_v17  ;;  %v463_v34 = vrot.slane %v462_v26, 4 }
 0x1c7   :  { %v405_v35 = vrot.slane %v404_v27, 1  ;;  %v411_v36 = vadd.f32 %v410_v28, %v409_v19  ;;  %v419_v37 = vrot.slane %v418_v29, 1  ;;  %v425_v38 = vadd.f32 %v424_v30, %v423_v22 }
 0x1c8   :  { %v444_v39 = vrot.slane %v443_v31, 2  ;;  %v450_v40 = vadd.f32 %v449_v32, %v448_v24  ;;  %v458_v41 = vrot.slane %v457_v33, 2  ;;  %v464_v42 = vadd.f32 %v463_v34, %v462_v26 }
 0x1c9   :  { %v406_v43 = vadd.f32 %v405_v35, %v404_v27  ;;  %v412_v44 = vrot.slane %v411_v36, 1  ;;  %v420_v45 = vadd.f32 %v419_v37, %v418_v29  ;;  %v426_v46 = vrot.slane %v425_v38, 1  ;;  %v511_v35 = vpop.permute.xlu1 %510 }
 0x1ca   :  { %v445_v47 = vadd.f32 %v444_v39, %v443_v31  ;;  %v451_v48 = vrot.slane %v450_v40, 2  ;;  %v459_v49 = vadd.f32 %v458_v41, %v457_v33  ;;  %v465_v50 = vrot.slane %v464_v42, 2 }
 0x1cb   :  { %v413_v56 = vadd.f32 %v412_v44, %v411_v36  ;;  %v427_v57 = vadd.f32 %v426_v46, %v425_v38  ;;  %v429_v58 = vmul.f32 0.25, %v406_v43  ;;  %v431_v52 = vmul.f32 0.25, %v420_v45 }
 0x1cc   :  { %v446_v61 = vrot.slane %v445_v47, 1  ;;  %v452_v63 = vadd.f32 %v451_v48, %v450_v40  ;;  %v460_v0 = vrot.slane %v459_v49, 1  ;;  %v466_v1 = vadd.f32 %v465_v50, %v464_v42 }
 0x1cd   :  { %v430_v4 = vmul.f32 0.25, %v413_v56  ;;  %v432_v5 = vmul.f32 0.25, %v427_v57  ;;  %v473_v6 = vmul.f32 %v429_v58, %v429_v58  ;;  %v475_v7 = vmul.f32 %v431_v52, %v431_v52 }
 0x1ce   :  { %v447_v8 = vadd.f32 %v446_v61, %v445_v47  ;;  %v453_v9 = vrot.slane %v452_v63, 1  ;;  %v461_v10 = vadd.f32 %v460_v0, %v459_v49  ;;  %v467_v12 = vrot.slane %v466_v1, 1  ;;  %v557_v47 = vpop.permute.xlu1 %556 }
 0x1cf   :  { %v474_v13 = vmul.f32 %v430_v4, %v430_v4  ;;  %v476_v14 = vmul.f32 %v432_v5, %v432_v5  ;;  %v485_v30 = vcombine.low %v429_v58, %v430_v4  ;;  %v486_v32 = vcombine.low %v431_v52, %v432_v5 }
 0x1d0   :  { %v454_v15 = vadd.f32 %v453_v9, %v452_v63  ;;  %v468_v16 = vadd.f32 %v467_v12, %v466_v1  ;;  %v469_v17 = vmul.f32 0.25, %v447_v8  ;;  %v471_v18 = vmul.f32 0.25, %v461_v10 }
 0x1d1   :  { %v489_v37 = vsub.f32 %v2320_v59, %v485_v30  ;;  %v490_v39 = vsub.f32 %v2322_v2, %v486_v32 }
 0x1d2   :  { %v470_v19 = vmul.f32 0.25, %v454_v15  ;;  %v472_v21 = vmul.f32 0.25, %v468_v16  ;;  %v477_v22 = vsub.f32 %v469_v17, %v473_v6  ;;  %v479_v23 = vsub.f32 %v471_v18, %v475_v7  ;;  %v613_v0 = vpop.permute.xlu1 %612 }
 0x1d4   :  { %v478_v24 = vsub.f32 %v470_v19, %v474_v13  ;;  %v480_v25 = vsub.f32 %v472_v21, %v476_v14  ;;  %v491_v26 = vadd.f32 1e-06, %v477_v22  ;;  %v493_v27 = vadd.f32 1e-06, %v479_v23  ;;  %v565_v13 = vpop.permute.xlu0 %564 }
 0x1d6   :  { %v492_v28 = vadd.f32 1e-06, %v478_v24  ;;  %v494_v29 = vadd.f32 1e-06, %v480_v25  ;;  %1985 = vrsqrt.f32 %v491_v26  ;;  %v661_v30 = vpop.permute.xlu1 %660 }
 0x1d7   :  { %1987 = vrsqrt.f32 %v493_v27 }
 0x1d8   :  { %1989 = vrsqrt.f32 %v492_v28 }
 0x1d9   :  { %1991 = vrsqrt.f32 %v494_v29 }
 0x1e0   :  { %v1986_v31 = vpop.eup %1985 }
 0x1e1   :  { %v1988_v33 = vpop.eup %1987 }
 0x1e2   :  { %v1990_v34 = vpop.eup %1989 }
 0x1e3   :  { %v1992_v36 = vpop.eup %1991  ;;  %v503_v38 = vcombine.low %v1986_v31, %v1990_v34 }
 0x1e4   :  { %v504_v40 = vcombine.low %v1988_v33, %v1992_v36 }
 0x1e5   :  { %v507_v41 = vmul.f32 %v503_v38, %v489_v37 }
 0x1e6   :  { %v2344_v42 = vmul.f32 %v504_v40, %v490_v39 }
 0x1e7   :  { %v518_v43 = vrot.slane %v507_v41, %v2280_v53  ;;  %v522_v44 = vrot.slane %v507_v41, %v2294_v62  ;;  %v618_v56 = vrot.slane %v507_v41, %v2286_v55  ;;  %v622_v57 = vrot.slane %v507_v41, %v2304_v11 }
 0x1e8   :  { %v526_v45 = vrot.slane %v2344_v42, %v2280_v53  ;;  %v530_v46 = vrot.slane %v2344_v42, %v2294_v62  ;;  %v626_v1 = vrot.slane %v2344_v42, %v2286_v55  ;;  %v630_v4 = vrot.slane %v2344_v42, %v2304_v11 }
 0x1e9   :  { %v538_v48 = vrot.slane %v518_v43, %v2280_v53  ;;  %v542_v49 = vrot.slane %v522_v44, %v2280_v53  ;;  %v638_v5 = vrot.slane %v618_v56, %v2286_v55  ;;  %v642_v6 = vrot.slane %v622_v57, %v2286_v55 }
 0x1ea   :  { %v546_v50 = vrot.slane %v526_v45, %v2280_v53  ;;  %v550_v58 = vrot.slane %v530_v46, %v2280_v53  ;;  %v666_v7 = vrot.slane %v507_v41, %v2290_v60  ;;  %v570_v8 = vrot.slane %v507_v41, %v2283_v54 }
 0x1eb   :  { %v551_v52 = vmul.f32 %v538_v48, %v511_v35  ;;  %v552_v61 = vmul.f32 %v542_v49, %v511_v35  ;;  %v574_v9 = vrot.slane %v507_v41, %v2298_v3  ;;  %v674_v12 = vrot.slane %v2344_v42, %v2290_v60 }
 0x1ec   :  { %v553_v63 = vmul.f32 %v546_v50, %v511_v35  ;;  %v554_v10 = vmul.f32 %v550_v58, %v511_v35  ;;  %v578_v14 = vrot.slane %v2344_v42, %v2283_v54  ;;  %v582_v15 = vrot.slane %v2344_v42, %v2298_v3 }
 0x1ed   :  { %v559_v16 = vadd.f32 %v557_v47, %v551_v52  ;;  %v560_v17 = vadd.f32 %v557_v47, %v552_v61  ;;  %v590_v18 = vrot.slane %v570_v8, %v2283_v54  ;;  %v594_v19 = vrot.slane %v574_v9, %v2283_v54 }
 0x1ee   :  { %v561_v21 = vadd.f32 %v557_v47, %v553_v63  ;;  %v646_v22 = vrot.slane %v626_v1, %v2286_v55  ;;  %v670_v23 = vrot.slane %v507_v41, %v2308_v20  ;;  %v598_v24 = vrot.slane %v578_v14, %v2283_v54 }
 0x1ef   :  { %v686_v25 = vrot.slane %v666_v7, %v2290_v60  ;;  %v602_v26 = vrot.slane %v582_v15, %v2283_v54  ;;  %v603_v27 = vmul.f32 %v590_v18, %v565_v13  ;;  %v604_v28 = vmul.f32 %v594_v19, %v565_v13  ;;  %v2427_v18 = vld [vmem:[#allocation8 + $0x10] sm:$0xff] }
 0x1f0   :  { %v650_v29 = vrot.slane %v630_v4, %v2286_v55  ;;  %v694_v31 = vrot.slane %v674_v12, %v2290_v60  ;;  %v605_v32 = vmul.f32 %v598_v24, %v565_v13  ;;  %v562_v33 = vadd.f32 %v557_v47, %v554_v10  ;;  %v2387_v47 = vpop.permute.xlu0 %708  ;;  %v2436_v24 = vld [vmem:[#allocation8 + $0x18] sm:$0xff] }
 0x1f1   :  { %v651_v34 = vmul.f32 %v638_v5, %v613_v0  ;;  %v607_v35 = vadd.f32 %v603_v27, %v559_v16  ;;  %v608_v36 = vadd.f32 %v604_v28, %v560_v17  ;;  %v652_v37 = vmul.f32 %v642_v6, %v613_v0  ;;  %v2425_v17 = vld [vmem:[#allocation8 + $0x8] sm:$0xff] }
 0x1f2   :  { %v653_v38 = vmul.f32 %v646_v22, %v613_v0  ;;  %v678_v39 = vrot.slane %v2344_v42, %v2308_v20  ;;  %v609_v40 = vadd.f32 %v605_v32, %v561_v21  ;;  %v690_v41 = vrot.slane %v670_v23, %v2290_v60  ;;  %v2391_v42 = vpop.permute.xlu1 %716  ;;  %v2434_v23 = vld [vmem:[#allocation8] sm:$0xff] }
 0x1f3   :  { %v699_v43 = vmul.f32 %v686_v25, %v661_v30  ;;  %v606_v44 = vmul.f32 %v602_v26, %v565_v13  ;;  %v655_v45 = vadd.f32 %v651_v34, %v607_v35  ;;  %v701_v46 = vmul.f32 %v694_v31, %v661_v30 }
 0x1f4   :  { %v657_v48 = vadd.f32 %v653_v38, %v609_v40  ;;  %v656_v50 = vadd.f32 %v652_v37, %v608_v36  ;;  %v654_v58 = vmul.f32 %v650_v29, %v613_v0  ;;  %v698_v52 = vrot.slane %v678_v39, %v2290_v60  ;;  %v2408_v7 = vpop.permute.xlu0 %804 }
 0x1f5   :  { %v610_v49 = vadd.f32 %v606_v44, %v562_v33  ;;  %v2385_v56 = vadd.f32 %v699_v43, %v655_v45  ;;  %v700_v61 = vmul.f32 %v690_v41, %v661_v30  ;;  %v2423_v16 = vand.u32 127, %v89_v51 }
 0x1f6   :  { %v705_v57 = vadd.f32 %v701_v46, %v657_v48  ;;  %v702_v6 = vmul.f32 %v698_v52, %v661_v30  ;;  %v760_v14 = vpop.permute.xlu1 %759  ;;  %v745_v21 = vrot.slane %v2425_v17, %v2280_v53  ;;  %v749_v22 = vrot.slane %v2427_v18, %v2280_v53 }
 0x1f7   :  { %723 = vrot.lane.b32.xlu1 %v2385_v56, %s2152_s3  ;;  %v658_v1 = vadd.f32 %v654_v58, %v610_v49  ;;  %v704_v4 = vadd.f32 %v700_v61, %v656_v50  ;;  %vm733_vm1 = vcmp.lt.s32.totalorder %v2423_v16, 17  ;;  %v741_v31 = vrot.slane %v2434_v23, %v2280_v53 }
 0x1f8   :  { %v713_v63 = vmul.f32 %v2387_v47, %v705_v57  ;;  %727 = vrot.lane.b32.xlu0 %v705_v57, %s2152_s3  ;;  %v2410_v8 = vpop.permute.xlu0 %849  ;;  %v753_v32 = vrot.slane %v2436_v24, %v2280_v53  ;;  %v711_v33 = vmul.f32 %v2387_v47, %v2385_v56  ;;  %vm778_vm2 = vcmp.lt.s32.totalorder %v2423_v16, 16 }
 0x1f9   :  { %v706_v0 = vadd.f32 %v702_v6, %v658_v1  ;;  %v712_v51 = vmul.f32 %v2387_v47, %v704_v4  ;;  %vm823_vm3 = vcmp.lt.s32.totalorder %v2423_v16, 15  ;;  %vm868_vm4 = vcmp.lt.s32.totalorder %v2423_v16, 1 }
 0x1fa   :  { %v2395_v5 = vadd.f32 %v2391_v42, %v713_v63  ;;  %v719_v46 = vadd.f32 %v2391_v42, %v711_v33  ;;  %v884_v33 = vrot.slane %v2427_v18, %v2290_v60  ;;  %vm913_vm5 = vcmp.lt.s32.totalorder %v2423_v16, 127 }
 0x1fb   :  { %725 = vrot.lane.b32.xlu1 %v704_v4, %s2152_s3  ;;  %v714_v34 = vmul.f32 %v2387_v47, %v706_v0  ;;  %v720_v35 = vadd.f32 %v2391_v42, %v712_v51  ;;  %v790_v51 = vrot.slane %v2425_v17, %v2283_v54  ;;  %vm958_vm6 = vcmp.lt.s32.totalorder %v2423_v16, 113 }
 0x1fc   :  { %774 = vrot.lane.b32.xlu0 %v705_v57, %s2153_s16  ;;  %v2412_v9 = vpop.permute.xlu0 %894  ;;  %vm1003_vm7 = vcmp.lt.s32.totalorder %v2423_v16, 112  ;;  %vm1048_vm8 = vcmp.lt.s32.totalorder %v2423_v16, 111 }
 0x1fd   :  { %v722_v48 = vadd.f32 %v2391_v42, %v714_v34 }
 0x1ff   :  { %729 = vrot.lane.b32.xlu1 %v706_v0, %s2152_s3 }
 0x200   :  { %819 = vrot.lane.b32.xlu0 %v705_v57, %s2154_s17  ;;  %v2414_v10 = vpop.permute.xlu0 %939 }
 0x203   :  { %770 = vrot.lane.b32.xlu1 %v2385_v56, %s2153_s16 }
 0x204   :  { %864 = vrot.lane.b32.xlu0 %v705_v57, %s2155_s18  ;;  %v2416_v12 = vpop.permute.xlu0 %984 }
 0x207   :  { %772 = vrot.lane.b32.xlu1 %v704_v4, %s2153_s16 }
 0x208   :  { %909 = vrot.lane.b32.xlu0 %v705_v57, %s2156_s19  ;;  %v2418_v13 = vpop.permute.xlu0 %1029 }
 0x20b   :  { %776 = vrot.lane.b32.xlu1 %v706_v0, %s2153_s16 }
 0x20c   :  { %954 = vrot.lane.b32.xlu0 %v705_v57, %s2157_s20  ;;  %v2420_v15 = vpop.permute.xlu0 %1074 }
 0x20f   :  { %815 = vrot.lane.b32.xlu1 %v2385_v56, %s2154_s17 }
 0x210   :  { %999 = vrot.lane.b32.xlu0 %v705_v57, %s2158_s22 }
 0x213   :  { %817 = vrot.lane.b32.xlu1 %v704_v4, %s2154_s17 }
 0x214   :  { %1040 = vrot.lane.b32.xlu0 %v2385_v56, %s2159_s23 }
 0x217   :  { %821 = vrot.lane.b32.xlu1 %v706_v0, %s2154_s17 }
 0x218   :  { %1044 = vrot.lane.b32.xlu0 %v705_v57, %s2159_s23 }
 0x21b   :  { %860 = vrot.lane.b32.xlu1 %v2385_v56, %s2155_s18 }
 0x21f   :  { %862 = vrot.lane.b32.xlu1 %v704_v4, %s2155_s18 }
 0x223   :  { %866 = vrot.lane.b32.xlu1 %v706_v0, %s2155_s18 }
 0x227   :  { %905 = vrot.lane.b32.xlu1 %v2385_v56, %s2156_s19 }
 0x22b   :  { %907 = vrot.lane.b32.xlu1 %v704_v4, %s2156_s19 }
 0x22f   :  { %911 = vrot.lane.b32.xlu1 %v706_v0, %s2156_s19 }
 0x233   :  { %950 = vrot.lane.b32.xlu1 %v2385_v56, %s2157_s20 }
 0x237   :  { %952 = vrot.lane.b32.xlu1 %v704_v4, %s2157_s20 }
 0x23b   :  { %956 = vrot.lane.b32.xlu1 %v706_v0, %s2157_s20 }
 0x23f   :  { %995 = vrot.lane.b32.xlu1 %v2385_v56, %s2158_s22 }
 0x243   :  { %997 = vrot.lane.b32.xlu1 %v704_v4, %s2158_s22 }
 0x247   :  { %1001 = vrot.lane.b32.xlu1 %v706_v0, %s2158_s22 }
 0x24b   :  { %1042 = vrot.lane.b32.xlu1 %v704_v4, %s2159_s23 }
 0x24f   :  { %1046 = vrot.lane.b32.xlu1 %v706_v0, %s2159_s23 }
 0x269   :  { %v724_v19 = vpop.permute.xlu1 %723 }
 0x26a   :  { %v728_v25 = vpop.permute.xlu0 %727 }
 0x26d   :  { %v726_v26 = vpop.permute.xlu1 %725 }
 0x26e   :  { %v735_v27 = vsel %vm733_vm1, %v726_v26, %v728_v25  ;;  %v736_v28 = vsel %vm733_vm1, %v724_v19, %v726_v26  ;;  %v775_v6 = vpop.permute.xlu0 %774  ;;  %v786_v26 = vrot.slane %v2434_v23, %v2283_v54 }
 0x26f   :  { %v755_v29 = vmul.f32 %v745_v21, %v736_v28  ;;  %v756_v30 = vmul.f32 %v749_v22, %v735_v27  ;;  %v798_v27 = vrot.slane %v2436_v24, %v2283_v54  ;;  %v835_v28 = vrot.slane %v2425_v17, %v2286_v55 }
 0x271   :  { %v763_v36 = vmul.f32 %v760_v14, %v755_v29  ;;  %v764_v37 = vmul.f32 %v760_v14, %v756_v30  ;;  %v730_v38 = vpop.permute.xlu1 %729  ;;  %v839_v29 = vrot.slane %v2427_v18, %v2286_v55  ;;  %v831_v30 = vrot.slane %v2434_v23, %v2286_v55 }
 0x272   :  { %v734_v39 = vsel %vm733_vm1, %v728_v25, %v730_v38  ;;  %v737_v40 = vsel %vm733_vm1, %v730_v38, %v724_v19  ;;  %v820_v42 = vpop.permute.xlu0 %819  ;;  %v794_v25 = vrot.slane %v2427_v18, %v2283_v54 }
 0x273   :  { %v2455_v41 = vadd.f32 %v763_v36, %v720_v35  ;;  %v2458_v43 = vadd.f32 %v764_v37, %v2395_v5  ;;  %v754_v44 = vmul.f32 %v741_v31, %v737_v40  ;;  %v757_v45 = vmul.f32 %v753_v32, %v734_v39 }
 0x274   :  { %v843_v31 = vrot.slane %v2436_v24, %v2286_v55  ;;  %v880_v32 = vrot.slane %v2425_v17, %v2290_v60 }
 0x275   :  { %v762_v49 = vmul.f32 %v760_v14, %v754_v44  ;;  %v765_v50 = vmul.f32 %v760_v14, %v757_v45  ;;  %v771_v56 = vpop.permute.xlu1 %770 }
 0x276   :  { %v2476_v21 = vpop.permute.xlu0 %864 }
 0x277   :  { %v2462_v47 = vadd.f32 %v762_v49, %v719_v46  ;;  %v2464_v57 = vadd.f32 %v765_v50, %v722_v48  ;;  %v970_v50 = vrot.slane %v2425_v17, %v2304_v11 }
 0x279   :  { %v773_v58 = vpop.permute.xlu1 %772 }
 0x27a   :  { %v2503_v34 = vpop.permute.xlu0 %909  ;;  %v780_v35 = vsel %vm778_vm2, %v773_v58, %v775_v6  ;;  %v781_v36 = vsel %vm778_vm2, %v771_v56, %v773_v58 }
 0x27b   :  { %v800_v58 = vmul.f32 %v790_v51, %v781_v36 }
 0x27d   :  { %v777_v52 = vpop.permute.xlu1 %776  ;;  %v808_v36 = vmul.f32 %v2408_v7, %v800_v58 }
 0x27e   :  { %v779_v40 = vsel %vm778_vm2, %v775_v6, %v777_v52  ;;  %v782_v44 = vsel %vm778_vm2, %v777_v52, %v771_v56  ;;  %v801_v52 = vmul.f32 %v794_v25, %v780_v35 }
 0x27f   :  { %v799_v45 = vmul.f32 %v786_v26, %v782_v44  ;;  %v802_v38 = vmul.f32 %v798_v27, %v779_v40 }
 0x280   :  { %v809_v40 = vmul.f32 %v2408_v7, %v801_v52  ;;  %v2572_v52 = vld [vmem:[#allocation8 + $0x30] sm:$0x7] }
 0x281   :  { %v816_v61 = vpop.permute.xlu1 %815  ;;  %v807_v44 = vmul.f32 %v2408_v7, %v799_v45 }
 0x285   :  { %v818_v63 = vpop.permute.xlu1 %817 }
 0x286   :  { %v825_v48 = vsel %vm823_vm3, %v818_v63, %v820_v42  ;;  %v826_v49 = vsel %vm823_vm3, %v816_v61, %v818_v63  ;;  %v966_v63 = vrot.slane %v2434_v23, %v2304_v11 }
 0x287   :  { %v845_v56 = vmul.f32 %v835_v28, %v826_v49  ;;  %v846_v51 = vmul.f32 %v839_v29, %v825_v48  ;;  %v2552_v28 = vld [vmem:[#allocation8 + $0x20] sm:$0x7]  ;;  %v2554_v29 = vld [vmem:[#allocation8 + $0x28] sm:$0x7] }
 0x289   :  { %v822_v1 = vpop.permute.xlu1 %821  ;;  %v854_v45 = vmul.f32 %v2410_v8, %v846_v51 }
 0x28a   :  { %v824_v6 = vsel %vm823_vm3, %v820_v42, %v822_v1  ;;  %v827_v46 = vsel %vm823_vm3, %v822_v1, %v816_v61  ;;  %v2545_v61 = vpop.permute.xlu0 %954 }
 0x28b   :  { %v844_v1 = vmul.f32 %v831_v30, %v827_v46  ;;  %v847_v26 = vmul.f32 %v843_v31, %v824_v6  ;;  %v810_v46 = vmul.f32 %v2408_v7, %v802_v38  ;;  %v2574_v6 = vld [vmem:[#allocation8 + $0x38] sm:$0x7]  ;;  %v853_v31 = vmul.f32 %v2410_v8, %v845_v56 }
 0x28c   :  { %v1064_v7 = vrot.slane %v2572_v52, %v2280_v53  ;;  %v811_v38 = vadd.f32 %v807_v44, %v2462_v47 }
 0x28d   :  { %v2466_v4 = vpop.permute.xlu1 %860  ;;  %v852_v30 = vmul.f32 %v2410_v8, %v844_v1  ;;  %v855_v42 = vmul.f32 %v2410_v8, %v847_v26  ;;  %v1068_v1 = vrot.slane %v2574_v6, %v2280_v53  ;;  %v812_v8 = vadd.f32 %v808_v36, %v2455_v41 }
 0x28e   :  { %v813_v26 = vadd.f32 %v809_v40, %v2458_v43  ;;  %v1000_v35 = vpop.permute.xlu0 %999 }
 0x28f   :  { %v857_v47 = vadd.f32 %v853_v31, %v812_v8  ;;  %v856_v36 = vadd.f32 %v852_v30, %v811_v38 }
 0x291   :  { %v2468_v5 = vpop.permute.xlu1 %862 }
 0x292   :  { %v870_v48 = vsel %vm868_vm4, %v2468_v5, %v2476_v21  ;;  %v871_v49 = vsel %vm868_vm4, %v2466_v4, %v2468_v5  ;;  %v1041_v8 = vpop.permute.xlu0 %1040 }
 0x293   :  { %v890_v51 = vmul.f32 %v880_v32, %v871_v49  ;;  %v891_v25 = vmul.f32 %v884_v33, %v870_v48  ;;  %v2902_v32 = vrot.slane %v2436_v24, %v2290_v60 }
 0x295   :  { %v2470_v0 = vpop.permute.xlu1 %866  ;;  %v898_v44 = vmul.f32 %v2412_v9, %v890_v51 }
 0x296   :  { %v869_v5 = vsel %vm868_vm4, %v2476_v21, %v2470_v0  ;;  %v872_v56 = vsel %vm868_vm4, %v2470_v0, %v2466_v4  ;;  %v814_v21 = vadd.f32 %v810_v46, %v2464_v57  ;;  %v2901_v4 = vrot.slane %v2434_v23, %v2290_v60 }
 0x297   :  { %v892_v33 = vmul.f32 %v2902_v32, %v869_v5  ;;  %v858_v57 = vadd.f32 %v854_v45, %v813_v26  ;;  %v899_v46 = vmul.f32 %v2412_v9, %v891_v25  ;;  %v902_v26 = vadd.f32 %v898_v44, %v857_v47 }
 0x298   :  { %v889_v0 = vmul.f32 %v2901_v4, %v872_v56  ;;  %v859_v40 = vadd.f32 %v855_v42, %v814_v21  ;;  %v2904_v42 = vrot.slane %v2425_v17, %v2298_v3  ;;  %v2905_v4 = vrot.slane %v2427_v18, %v2298_v3 }
 0x299   :  { %v2472_v19 = vpop.permute.xlu1 %905  ;;  %v900_v5 = vmul.f32 %v2412_v9, %v892_v33  ;;  %v903_v21 = vadd.f32 %v899_v46, %v858_v57  ;;  %v2909_v47 = vrot.slane %v2427_v18, %v2304_v11  ;;  %v2910_v44 = vrot.slane %v2436_v24, %v2304_v11 }
 0x29d   :  { %v2474_v14 = vpop.permute.xlu1 %907 }
 0x29e   :  { %v915_v41 = vsel %vm913_vm5, %v2474_v14, %v2503_v34  ;;  %v916_v43 = vsel %vm913_vm5, %v2472_v19, %v2474_v14  ;;  %v2903_v14 = vrot.slane %v2434_v23, %v2298_v3 }
 0x29f   :  { %v935_v30 = vmul.f32 %v2904_v42, %v915_v41 }
 0x2a0   :  { %v934_v31 = vmul.f32 %v2903_v14, %v916_v43  ;;  %v904_v14 = vadd.f32 %v900_v5, %v859_v40 }
 0x2a1   :  { %v2479_v22 = vpop.permute.xlu1 %911  ;;  %v943_v33 = vmul.f32 %v2414_v10, %v935_v30 }
 0x2a2   :  { %v914_v25 = vsel %vm913_vm5, %v2503_v34, %v2479_v22  ;;  %v917_v45 = vsel %vm913_vm5, %v2479_v22, %v2472_v19 }
 0x2a5   :  { %v2513_v39 = vpop.permute.xlu1 %950 }
 0x2a9   :  { %v953_v37 = vpop.permute.xlu1 %952 }
 0x2aa   :  { %v960_v48 = vsel %vm958_vm6, %v953_v37, %v2545_v61  ;;  %v961_v49 = vsel %vm958_vm6, %v2513_v39, %v953_v37  ;;  %v897_v37 = vmul.f32 %v2412_v9, %v889_v0  ;;  %v936_v0 = vmul.f32 %v2905_v4, %v914_v25 }
 0x2ab   :  { %v979_v34 = vmul.f32 %v966_v63, %v961_v49  ;;  %v980_v19 = vmul.f32 %v970_v50, %v960_v48  ;;  %v2906_v63 = vrot.slane %v2436_v24, %v2298_v3  ;;  %v942_v50 = vmul.f32 %v2414_v10, %v934_v31 }
 0x2ac   :  { %v901_v49 = vadd.f32 %v897_v37, %v856_v36  ;;  %v944_v42 = vmul.f32 %v2414_v10, %v936_v0  ;;  %v2911_v25 = vrot.slane %v2427_v18, %v2308_v20  ;;  %v947_v36 = vadd.f32 %v943_v33, %v902_v26 }
 0x2ad   :  { %v957_v58 = vpop.permute.xlu1 %956  ;;  %v937_v32 = vmul.f32 %v2906_v63, %v917_v45  ;;  %v988_v31 = vmul.f32 %v2416_v12, %v980_v19  ;;  %v2914_v26 = vrot.slane %v2554_v29, %v2280_v53 }
 0x2ae   :  { %v959_v22 = vsel %vm958_vm6, %v2545_v61, %v957_v58  ;;  %v962_v9 = vsel %vm958_vm6, %v957_v58, %v2513_v39  ;;  %v2907_v61 = vrot.slane %v2434_v23, %v2308_v20  ;;  %v2908_v39 = vrot.slane %v2425_v17, %v2308_v20 }
 0x2af   :  { %v981_v57 = vmul.f32 %v2909_v47, %v959_v22  ;;  %v982_v46 = vmul.f32 %v2910_v44, %v962_v9  ;;  %v987_v17 = vmul.f32 %v2416_v12, %v979_v34  ;;  %v945_v30 = vmul.f32 %v2414_v10, %v937_v32 }
 0x2b0   :  { %v992_v19 = vadd.f32 %v988_v31, %v947_v36  ;;  %v2913_v22 = vrot.slane %v2552_v28, %v2280_v53  ;;  %v948_v0 = vadd.f32 %v944_v42, %v903_v21 }
 0x2b1   :  { %v996_v27 = vpop.permute.xlu1 %995  ;;  %v990_v10 = vmul.f32 %v2416_v12, %v982_v46  ;;  %v949_v63 = vadd.f32 %v945_v30, %v904_v14 }
 0x2b5   :  { %v998_v38 = vpop.permute.xlu1 %997 }
 0x2b6   :  { %v1005_v56 = vsel %vm1003_vm7, %v998_v38, %v1000_v35  ;;  %v1006_v51 = vsel %vm1003_vm7, %v996_v27, %v998_v38 }
 0x2b7   :  { %v1024_v41 = vmul.f32 %v2907_v61, %v1006_v51  ;;  %v1025_v58 = vmul.f32 %v2908_v39, %v1005_v56  ;;  %v1045_v56 = vpop.permute.xlu0 %1044  ;;  %v989_v51 = vmul.f32 %v2416_v12, %v981_v57 }
 0x2b9   :  { %v1002_v43 = vpop.permute.xlu1 %1001  ;;  %v1032_v40 = vmul.f32 %v2418_v13, %v1024_v41  ;;  %v1033_v37 = vmul.f32 %v2418_v13, %v1025_v58  ;;  %v993_v58 = vadd.f32 %v989_v51, %v948_v0  ;;  %v2160_v51 = vmov 24  }
 0x2ba   :  { %v1004_v48 = vsel %vm1003_vm7, %v1000_v35, %v1002_v43  ;;  %v1007_v23 = vsel %vm1003_vm7, %v1002_v43, %v996_v27  ;;  %v2912_v35 = vrot.slane %v2436_v24, %v2308_v20  ;;  %v946_v27 = vadd.f32 %v942_v50, %v901_v49  ;;  %1969 = vset.pattern.permute.xlu0 %v2160_v51 }
 0x2bb   :  { %v1026_v45 = vmul.f32 %v2911_v25, %v1004_v48  ;;  %v1037_v33 = vadd.f32 %v1033_v37, %v992_v19  ;;  %v994_v43 = vadd.f32 %v990_v10, %v949_v63  ;;  %1970 = vset.pattern.permute.xlu1 %v2160_v51  ;;  %v1158_v51 = vrot.slane %v2572_v52, %v2283_v54 }
 0x2bc   :  { %v1027_v38 = vmul.f32 %v2912_v35, %v1007_v23  ;;  %v991_v24 = vadd.f32 %v987_v17, %v946_v27 }
 0x2bd   :  { %v1043_v5 = vpop.permute.xlu1 %1042  ;;  %v1034_v12 = vmul.f32 %v2418_v13, %v1026_v45 }
 0x2be   :  { %v1050_v18 = vsel %vm1048_vm8, %v1043_v5, %v1045_v56  ;;  %v1051_v34 = vsel %vm1048_vm8, %v1041_v8, %v1043_v5  ;;  %v1035_v32 = vmul.f32 %v2418_v13, %v1027_v38  ;;  %v1036_v50 = vadd.f32 %v1032_v40, %v991_v24 }
 0x2bf   :  { %v1069_v9 = vmul.f32 %v2913_v22, %v1051_v34  ;;  %v1070_v4 = vmul.f32 %v2914_v26, %v1050_v18  ;;  %v1038_v48 = vadd.f32 %v1034_v12, %v993_v58  ;;  %v2739_v34 = vld [vmem:[%s2899_s4] sm:$0xff]  ;;  %s2161_s4 = smov 126  }
 0x2c0   :  { %v1039_v23 = vadd.f32 %v1035_v32, %v994_v43 }
 0x2c1   :  { %v1077_v61 = vmul.f32 %v2420_v15, %v1069_v9  ;;  %v1078_v41 = vmul.f32 %v2420_v15, %v1070_v4  ;;  %v1047_v39 = vpop.permute.xlu1 %1046 }
 0x2c2   :  { %v1049_v47 = vsel %vm1048_vm8, %v1045_v56, %v1047_v39  ;;  %v1052_v21 = vsel %vm1048_vm8, %v1047_v39, %v1041_v8 }
 0x2c3   :  { %v1071_v57 = vmul.f32 %v1064_v7, %v1049_v47  ;;  %v1072_v13 = vmul.f32 %v1068_v1, %v1052_v21  ;;  %v1081_v44 = vadd.f32 %v1077_v61, %v1036_v50  ;;  %v1082_v46 = vadd.f32 %v1078_v41, %v1037_v33 }
 0x2c5   :  { %v1079_v49 = vmul.f32 %v2420_v15, %v1071_v57  ;;  %v1080_v14 = vmul.f32 %v2420_v15, %v1072_v13  ;;  %v1089_v17 = vrot.slane %v1081_v44, 4  ;;  %v1090_v31 = vrot.slane %v1082_v46, 4 }
 0x2c7   :  { %v2719_v16 = vmul.f32 %v1089_v17, %v1081_v44  ;;  %v2721_v8 = vmul.f32 %v1090_v31, %v1082_v46  ;;  %v1083_v42 = vadd.f32 %v1079_v49, %v1038_v48  ;;  %v1084_v7 = vadd.f32 %v1080_v14, %v1039_v23 }
 0x2c8   :  { %v2163_v17 = vmov 29   ;;  %v2164_v31 = vmov 28  }
 0x2c9   :  { %v1101_v30 = vsel %vm399_vm0, %v2719_v16, 0.0  ;;  %v1102_v1 = vsel %vm399_vm0, %v2721_v8, 0.0  ;;  %v1091_v25 = vrot.slane %v1083_v42, 4  ;;  %v1092_v45 = vrot.slane %v1084_v7, 4 }
 0x2ca   :  { %v1103_v35 = vadd.f32 %v1102_v1, %v1101_v30  ;;  %v2167_v30 = vmov 34   ;;  %v2168_v1 = vmov 31  }
 0x2cb   :  { %v2727_v38 = vmul.f32 %v1091_v25, %v1083_v42  ;;  %v2729_v15 = vmul.f32 %v1092_v45, %v1084_v7  ;;  %v2165_v42 = vmov 32   ;;  %v2166_v7 = vmov 30  }
 0x2cc   :  { %1104 = vadd.xlane.f32.xlu0 %v1103_v35  ;;  %v2169_v25 = vmov 38   ;;  %v2170_v45 = vmov 36   ;;  %v2171_v35 = vmov 40  }
 0x2cd   :  { %v1167_v56 = vsel %vm399_vm0, %v2727_v38, 0.0  ;;  %v1168_v27 = vsel %vm399_vm0, %v2729_v15, 0.0 }
 0x2ce   :  { %v1169_v36 = vadd.f32 %v1168_v27, %v1167_v56  ;;  %v2172_v56 = vmov 33   ;;  %v2173_v27 = vmov 35  }
 0x2d0   :  { %1170 = vadd.xlane.f32.xlu1 %v1169_v36  ;;  %v2174_v36 = vmov 37  }
 0x359   :  { %v1105_v40 = vpop.xlane.xlu0 %1104 }
 0x35a   :  { %v1106_v37 = vmul.f32 0.00390625, %v1105_v40  ;;  %v2175_v40 = vmov 39  }
 0x35c   :  { %v1115_v5 = vrot.slane %v1106_v37, %v2283_v54  ;;  %v1125_v19 = vrot.slane %v1106_v37, %v2286_v55  ;;  %v1135_v0 = vrot.slane %v1106_v37, %v2290_v60  ;;  %v1110_v33 = vrot.slane %v1106_v37, %v2280_v53 }
 0x35d   :  { %v1171_v10 = vpop.xlane.xlu1 %1170  ;;  %v1150_v37 = vrot.slane %v2552_v28, %v2283_v54 }
 0x35e   :  { %v1172_v18 = vmul.f32 0.00390625, %v1171_v10  ;;  %v1116_v24 = vmul.f32 %v2739_v34, %v1115_v5  ;;  %v1126_v26 = vmul.f32 %v2739_v34, %v1125_v19  ;;  %v1136_v12 = vmul.f32 %v2739_v34, %v1135_v0 }
 0x35f   :  { %v1111_v41 = vmul.f32 %v2739_v34, %v1110_v33  ;;  %v1154_v5 = vrot.slane %v2554_v29, %v2283_v54  ;;  %v1162_v10 = vrot.slane %v2574_v6, %v2283_v54  ;;  %v1220_v19 = vrot.slane %v2554_v29, %v2286_v55 }
 0x360   :  { %1118 = vrot.lane.b32.xlu0 %v1116_v24, %s2156_s19  ;;  %v1181_v22 = vrot.slane %v1172_v18, %v2283_v54  ;;  %v1191_v4 = vrot.slane %v1172_v18, %v2286_v55  ;;  %v1201_v32 = vrot.slane %v1172_v18, %v2290_v60  ;;  %v1176_v39 = vrot.slane %v1172_v18, %v2280_v53 }
 0x361   :  { %v1216_v24 = vrot.slane %v2552_v28, %v2286_v55 }
 0x362   :  { %v1182_v9 = vmul.f32 %v2739_v34, %v1181_v22  ;;  %v1192_v63 = vmul.f32 %v2739_v34, %v1191_v4  ;;  %v1202_v50 = vmul.f32 %v2739_v34, %v1201_v32  ;;  %v1177_v21 = vmul.f32 %v2739_v34, %v1176_v39 }
 0x363   :  { %v1228_v22 = vrot.slane %v2574_v6, %v2286_v55 }
 0x364   :  { %1184 = vrot.lane.b32.xlu1 %v1182_v9, %s2156_s19  ;;  %1128 = vrot.lane.b32.xlu0 %v1126_v26, %s2161_s4 }
 0x368   :  { %1194 = vrot.lane.b32.xlu1 %v1192_v63, %s2161_s4  ;;  %1138 = vrot.lane.b32.xlu0 %v1136_v12, %s2162_s26 }
 0x36c   :  { %1204 = vrot.lane.b32.xlu1 %v1202_v50, %s2162_s26 }
 0x3d2   :  { %v1119_v61 = vpop.permute.xlu0 %1118 }
 0x3d3   :  { %v1121_v47 = vadd.f32 %v1119_v61, %v1111_v41 }
 0x3d6   :  { %v1185_v58 = vpop.permute.xlu1 %1184  ;;  %v1129_v43 = vpop.permute.xlu0 %1128 }
 0x3d7   :  { %v1131_v57 = vadd.f32 %v1129_v43, %v1121_v47  ;;  %v1187_v46 = vadd.f32 %v1185_v58, %v1177_v21 }
 0x3da   :  { %v1195_v13 = vpop.permute.xlu1 %1194  ;;  %v1139_v44 = vpop.permute.xlu0 %1138 }
 0x3db   :  { %v1141_v48 = vadd.f32 %v1139_v44, %v1131_v57  ;;  %v1197_v23 = vadd.f32 %v1195_v13, %v1187_v46 }
 0x3dd   :  { %1144 = vperm.xlu0 %1969, %v1141_v48  }
 0x3de   :  { %v1205_v49 = vpop.permute.xlu1 %1204 }
 0x3df   :  { %v1207_v14 = vadd.f32 %v1205_v49, %v1197_v23 }
 0x3e1   :  { %1210 = vperm.xlu1 %1970, %v1207_v14   ;;  %1972 = vset.pattern.permute.xlu0 %v2163_v17 }
 0x3e2   :  { %1266 = vperm.xlu0 %1972, %v2739_v34  }
 0x3e5   :  { %1971 = vset.pattern.permute.xlu1 %v2164_v31 }
 0x3e6   :  { %1242 = vperm.xlu1 %1971, %v2739_v34   ;;  %1975 = vset.pattern.permute.xlu0 %v2165_v42 }
 0x3e7   :  { %1474 = vperm.xlu0 %1975, %v2739_v34  }
 0x3ea   :  { %1973 = vset.pattern.permute.xlu1 %v2166_v7 }
 0x3eb   :  { %1294 = vperm.xlu1 %1973, %v2739_v34   ;;  %1978 = vset.pattern.permute.xlu0 %v2167_v30 }
 0x3ec   :  { %1576 = vperm.xlu0 %1978, %v2739_v34  }
 0x3ef   :  { %1974 = vset.pattern.permute.xlu1 %v2168_v1 }
 0x3f0   :  { %1322 = vperm.xlu1 %1974, %v2739_v34   ;;  %1981 = vset.pattern.permute.xlu0 %v2169_v25 }
 0x3f1   :  { %1712 = vperm.xlu0 %1981, %v2739_v34  }
 0x3f4   :  { %1976 = vset.pattern.permute.xlu1 %v2170_v45 }
 0x3f5   :  { %1520 = vperm.xlu1 %1976, %v2739_v34   ;;  %1984 = vset.pattern.permute.xlu0 %v2171_v35 }
 0x3f9   :  { %1977 = vset.pattern.permute.xlu1 %v2172_v56 }
 0x3fa   :  { %1528 = vperm.xlu1 %1977, %v2739_v34  }
 0x3fe   :  { %1979 = vset.pattern.permute.xlu1 %v2173_v27 }
 0x3ff   :  { %1624 = vperm.xlu1 %1979, %v2739_v34  }
 0x403   :  { %1980 = vset.pattern.permute.xlu1 %v2174_v36 }
 0x404   :  { %1688 = vperm.xlu1 %1980, %v2739_v34  }
 0x408   :  { %1982 = vset.pattern.permute.xlu1 %v2175_v40 }
 0x409   :  { %1740 = vperm.xlu1 %1982, %v2739_v34  }
 0x40d   :  { %1983 = vset.pattern.permute.xlu1 %v2171_v35 }
 0x40e   :  { %1768 = vperm.xlu1 %1983, %v2739_v34   ;;  %v1224_v34 = vrot.slane %v2572_v52, %v2286_v55 }
 0x45c   :  { %v1145_v18 = vpop.permute.xlu0 %1144 }
 0x45d   :  { %v1163_v9 = vmul.f32 %v1150_v37, %v1145_v18  ;;  %v1164_v26 = vmul.f32 %v1154_v5, %v1145_v18  ;;  %v1165_v4 = vmul.f32 %v1158_v51, %v1145_v18  ;;  %v1166_v0 = vmul.f32 %v1162_v10, %v1145_v18 }
 0x460   :  { %v1211_v63 = vpop.permute.xlu1 %1210 }
 0x461   :  { %v1229_v12 = vmul.f32 %v1216_v24, %v1211_v63  ;;  %v1230_v32 = vmul.f32 %v1220_v19, %v1211_v63  ;;  %v1231_v50 = vmul.f32 %v1224_v34, %v1211_v63  ;;  %v1232_v33 = vmul.f32 %v1228_v22, %v1211_v63  ;;  %v1267_v44 = vpop.permute.xlu0 %1266 }
 0x463   :  { %v1233_v61 = vadd.f32 %v1229_v12, %v1163_v9  ;;  %v1234_v28 = vadd.f32 %v1230_v32, %v1164_v26  ;;  %v1235_v41 = vadd.f32 %v1231_v50, %v1165_v4  ;;  %v1236_v39 = vadd.f32 %v1232_v33, %v1166_v0 }
 0x465   :  { %v1237_v29 = vmul.f32 %v1233_v61, %v2719_v16  ;;  %v1238_v52 = vmul.f32 %v1234_v28, %v2721_v8  ;;  %v1239_v58 = vmul.f32 %v1235_v41, %v2727_v38  ;;  %v1240_v6 = vmul.f32 %v1236_v39, %v2729_v15  ;;  %v1243_v43 = vpop.permute.xlu1 %1242 }
 0x467   :  { %v1248_v47 = vrot.slane %v1237_v29, %v2280_v53  ;;  %v1252_v21 = vrot.slane %v1238_v52, %v2280_v53  ;;  %v1256_v57 = vrot.slane %v1239_v58, %v2280_v53  ;;  %v1260_v13 = vrot.slane %v1240_v6, %v2280_v53 }
 0x468   :  { %v1272_v46 = vrot.slane %v1237_v29, %v2283_v54  ;;  %v1276_v16 = vrot.slane %v1238_v52, %v2283_v54  ;;  %v1280_v8 = vrot.slane %v1239_v58, %v2283_v54  ;;  %v1284_v38 = vrot.slane %v1240_v6, %v2283_v54 }
 0x469   :  { %v1261_v48 = vmul.f32 %v1248_v47, %v1243_v43  ;;  %v1262_v15 = vmul.f32 %v1252_v21, %v1243_v43  ;;  %v1263_v23 = vmul.f32 %v1256_v57, %v1243_v43  ;;  %v1264_v49 = vmul.f32 %v1260_v13, %v1243_v43 }
 0x46a   :  { %v1285_v14 = vmul.f32 %v1272_v46, %v1267_v44  ;;  %v1286_v17 = vmul.f32 %v1276_v16, %v1267_v44  ;;  %v1287_v31 = vmul.f32 %v1280_v8, %v1267_v44  ;;  %v1288_v42 = vmul.f32 %v1284_v38, %v1267_v44  ;;  %v1295_v7 = vpop.permute.xlu1 %1294 }
 0x46b   :  { %v1300_v30 = vrot.slane %v1237_v29, %v2286_v55  ;;  %v1304_v1 = vrot.slane %v1238_v52, %v2286_v55  ;;  %v1308_v25 = vrot.slane %v1239_v58, %v2286_v55  ;;  %v1312_v45 = vrot.slane %v1240_v6, %v2286_v55 }
 0x46c   :  { %v1289_v35 = vadd.f32 %v1285_v14, %v1261_v48  ;;  %v1290_v56 = vadd.f32 %v1286_v17, %v1262_v15  ;;  %v1291_v27 = vadd.f32 %v1287_v31, %v1263_v23  ;;  %v1292_v36 = vadd.f32 %v1288_v42, %v1264_v49 }
 0x46d   :  { %v1313_v40 = vmul.f32 %v1300_v30, %v1295_v7  ;;  %v1314_v37 = vmul.f32 %v1304_v1, %v1295_v7  ;;  %v1315_v5 = vmul.f32 %v1308_v25, %v1295_v7  ;;  %v1316_v51 = vmul.f32 %v1312_v45, %v1295_v7 }
 0x46e   :  { %v1328_v10 = vrot.slane %v1237_v29, %v2290_v60  ;;  %v1332_v18 = vrot.slane %v1238_v52, %v2290_v60  ;;  %v1336_v24 = vrot.slane %v1239_v58, %v2290_v60  ;;  %v1340_v19 = vrot.slane %v1240_v6, %v2290_v60 }
 0x46f   :  { %v1317_v34 = vadd.f32 %v1313_v40, %v1289_v35  ;;  %v1318_v22 = vadd.f32 %v1314_v37, %v1290_v56  ;;  %v1319_v9 = vadd.f32 %v1315_v5, %v1291_v27  ;;  %v1320_v26 = vadd.f32 %v1316_v51, %v1292_v36  ;;  %v1323_v4 = vpop.permute.xlu1 %1322 }
 0x470   :  { %v1341_v0 = vmul.f32 %v1328_v10, %v1323_v4  ;;  %v1342_v63 = vmul.f32 %v1332_v18, %v1323_v4  ;;  %v1343_v12 = vmul.f32 %v1336_v24, %v1323_v4  ;;  %v1344_v32 = vmul.f32 %v1340_v19, %v1323_v4 }
 0x472   :  { %v1345_v50 = vadd.f32 %v1341_v0, %v1317_v34  ;;  %v1346_v33 = vadd.f32 %v1342_v63, %v1318_v22  ;;  %v1347_v61 = vadd.f32 %v1343_v12, %v1319_v9  ;;  %v1348_v28 = vadd.f32 %v1344_v32, %v1320_v26 }
 0x474   :  { %v1353_v41 = vcombine.low %v1345_v50, %v1346_v33  ;;  %v1354_v39 = vcombine.low %v1347_v61, %v1348_v28 }
 0x476   :  { %v2808_v29 = vadd.f32 %v1353_v41, %v2320_v59  ;;  %v2811_v52 = vadd.f32 %v1354_v39, %v2322_v2 }
 0x478   :  { %v1361_v58 = vcombine.high %v2808_v29, %v2808_v29  ;;  %v1362_v6 = vcombine.high %v2811_v52, %v2811_v52  ;;  %v1365_v43 = vsel %vm399_vm0, %v2808_v29, 0.0  ;;  %v1379_v47 = vsel %vm399_vm0, %v2811_v52, 0.0 }
 0x479   :  { %v1366_v21 = vrot.slane %v1365_v43, 4  ;;  %v1380_v57 = vrot.slane %v1379_v47, 4  ;;  %v1397_v59 = vmul.f32 %v2808_v29, %v2808_v29  ;;  %v1398_v2 = vmul.f32 %v2811_v52, %v2811_v52 }
 0x47a   :  { %v1372_v13 = vsel %vm399_vm0, %v1361_v58, 0.0  ;;  %v1386_v44 = vsel %vm399_vm0, %v1362_v6, 0.0 }
 0x47b   :  { %v1367_v46 = vadd.f32 %v1366_v21, %v1365_v43  ;;  %v1373_v16 = vrot.slane %v1372_v13, 4  ;;  %v1381_v8 = vadd.f32 %v1380_v57, %v1379_v47  ;;  %v1387_v38 = vrot.slane %v1386_v44, 4 }
 0x47c   :  { %v1401_v48 = vcombine.high %v1397_v59, %v1397_v59  ;;  %v1402_v15 = vcombine.high %v1398_v2, %v1398_v2  ;;  %v1405_v23 = vsel %vm399_vm0, %v1397_v59, 0.0  ;;  %v1419_v49 = vsel %vm399_vm0, %v1398_v2, 0.0 }
 0x47d   :  { %v1368_v14 = vrot.slane %v1367_v46, 2  ;;  %v1374_v17 = vadd.f32 %v1373_v16, %v1372_v13  ;;  %v1382_v31 = vrot.slane %v1381_v8, 2  ;;  %v1388_v42 = vadd.f32 %v1387_v38, %v1386_v44 }
 0x47e   :  { %v1406_v7 = vrot.slane %v1405_v23, 4  ;;  %v1412_v30 = vsel %vm399_vm0, %v1401_v48, 0.0  ;;  %v1420_v1 = vrot.slane %v1419_v49, 4  ;;  %v1426_v25 = vsel %vm399_vm0, %v1402_v15, 0.0 }
 0x47f   :  { %v1369_v45 = vadd.f32 %v1368_v14, %v1367_v46  ;;  %v1375_v35 = vrot.slane %v1374_v17, 2  ;;  %v1383_v56 = vadd.f32 %v1382_v31, %v1381_v8  ;;  %v1389_v27 = vrot.slane %v1388_v42, 2 }
 0x480   :  { %v1407_v36 = vadd.f32 %v1406_v7, %v1405_v23  ;;  %v1413_v40 = vrot.slane %v1412_v30, 4  ;;  %v1421_v37 = vadd.f32 %v1420_v1, %v1419_v49  ;;  %v1427_v5 = vrot.slane %v1426_v25, 4 }
 0x481   :  { %v1370_v51 = vrot.slane %v1369_v45, 1  ;;  %v1376_v10 = vadd.f32 %v1375_v35, %v1374_v17  ;;  %v1384_v18 = vrot.slane %v1383_v56, 1  ;;  %v1390_v24 = vadd.f32 %v1389_v27, %v1388_v42 }
 0x482   :  { %v1408_v19 = vrot.slane %v1407_v36, 2  ;;  %v1414_v34 = vadd.f32 %v1413_v40, %v1412_v30  ;;  %v1422_v22 = vrot.slane %v1421_v37, 2  ;;  %v1428_v9 = vadd.f32 %v1427_v5, %v1426_v25 }
 0x483   :  { %v1371_v26 = vadd.f32 %v1370_v51, %v1369_v45  ;;  %v1377_v4 = vrot.slane %v1376_v10, 1  ;;  %v1385_v0 = vadd.f32 %v1384_v18, %v1383_v56  ;;  %v1391_v63 = vrot.slane %v1390_v24, 1 }
 0x484   :  { %v1409_v12 = vadd.f32 %v1408_v19, %v1407_v36  ;;  %v1415_v32 = vrot.slane %v1414_v34, 2  ;;  %v1423_v50 = vadd.f32 %v1422_v22, %v1421_v37  ;;  %v1429_v33 = vrot.slane %v1428_v9, 2 }
 0x485   :  { %v1378_v61 = vadd.f32 %v1377_v4, %v1376_v10  ;;  %v1392_v28 = vadd.f32 %v1391_v63, %v1390_v24  ;;  %v1393_v41 = vmul.f32 0.25, %v1371_v26  ;;  %v1395_v39 = vmul.f32 0.25, %v1385_v0  ;;  %v1521_v0 = vpop.permute.xlu1 %1520 }
 0x486   :  { %v1410_v58 = vrot.slane %v1409_v12, 1  ;;  %v1416_v6 = vadd.f32 %v1415_v32, %v1414_v34  ;;  %v1424_v43 = vrot.slane %v1423_v50, 1  ;;  %v1430_v47 = vadd.f32 %v1429_v33, %v1428_v9 }
 0x487   :  { %v1394_v21 = vmul.f32 0.25, %v1378_v61  ;;  %v1396_v57 = vmul.f32 0.25, %v1392_v28  ;;  %v1437_v59 = vmul.f32 %v1393_v41, %v1393_v41  ;;  %v1439_v2 = vmul.f32 %v1395_v39, %v1395_v39 }
 0x488   :  { %v1411_v13 = vadd.f32 %v1410_v58, %v1409_v12  ;;  %v1417_v44 = vrot.slane %v1416_v6, 1  ;;  %v1425_v46 = vadd.f32 %v1424_v43, %v1423_v50  ;;  %v1431_v16 = vrot.slane %v1430_v47, 1 }
 0x489   :  { %v1438_v8 = vmul.f32 %v1394_v21, %v1394_v21  ;;  %v1440_v38 = vmul.f32 %v1396_v57, %v1396_v57  ;;  %v1449_v56 = vcombine.low %v1393_v41, %v1394_v21  ;;  %v1450_v36 = vcombine.low %v1395_v39, %v1396_v57  ;;  %v1475_v39 = vpop.permute.xlu0 %1474 }
 0x48a   :  { %v1418_v48 = vadd.f32 %v1417_v44, %v1416_v6  ;;  %v1432_v15 = vadd.f32 %v1431_v16, %v1430_v47  ;;  %v1433_v23 = vmul.f32 0.25, %v1411_v13  ;;  %v1435_v49 = vmul.f32 0.25, %v1425_v46  ;;  %v1529_v13 = vpop.permute.xlu1 %1528 }
 0x48b   :  { %v1453_v51 = vsub.f32 %v2808_v29, %v1449_v56  ;;  %v1454_v18 = vsub.f32 %v2811_v52, %v1450_v36 }
 0x48c   :  { %v1434_v14 = vmul.f32 0.25, %v1418_v48  ;;  %v1436_v17 = vmul.f32 0.25, %v1432_v15  ;;  %v1441_v31 = vsub.f32 %v1433_v23, %v1437_v59  ;;  %v1443_v42 = vsub.f32 %v1435_v49, %v1439_v2 }
 0x48e   :  { %v1442_v7 = vsub.f32 %v1434_v14, %v1438_v8  ;;  %v1444_v30 = vsub.f32 %v1436_v17, %v1440_v38  ;;  %v1455_v1 = vadd.f32 1e-06, %v1441_v31  ;;  %v1457_v25 = vadd.f32 1e-06, %v1443_v42 }
 0x490   :  { %v1456_v45 = vadd.f32 1e-06, %v1442_v7  ;;  %v1458_v35 = vadd.f32 1e-06, %v1444_v30  ;;  %1993 = vrsqrt.f32 %v1455_v1 }
 0x491   :  { %1995 = vrsqrt.f32 %v1457_v25 }
 0x492   :  { %1997 = vrsqrt.f32 %v1456_v45 }
 0x493   :  { %1999 = vrsqrt.f32 %v1458_v35  ;;  %v1577_v35 = vpop.permute.xlu0 %1576 }
 0x49a   :  { %v1994_v27 = vpop.eup %1993 }
 0x49b   :  { %v1996_v40 = vpop.eup %1995 }
 0x49c   :  { %v1998_v37 = vpop.eup %1997 }
 0x49d   :  { %v2000_v5 = vpop.eup %1999  ;;  %v1467_v10 = vcombine.low %v1994_v27, %v1998_v37 }
 0x49e   :  { %v1468_v24 = vcombine.low %v1996_v40, %v2000_v5  ;;  %v1625_v40 = vpop.permute.xlu1 %1624 }
 0x49f   :  { %v1471_v19 = vmul.f32 %v1467_v10, %v1453_v51 }
 0x4a0   :  { %v1472_v34 = vmul.f32 %v1468_v24, %v1454_v18 }
 0x4a1   :  { %v1534_v22 = vrot.slane %v1471_v19, %v2283_v54  ;;  %v1538_v9 = vrot.slane %v1471_v19, %v2298_v3  ;;  %v1482_v26 = vrot.slane %v1471_v19, %v2280_v53  ;;  %v1486_v4 = vrot.slane %v1471_v19, %v2294_v62 }
 0x4a2   :  { %v1542_v63 = vrot.slane %v1472_v34, %v2283_v54  ;;  %v1546_v12 = vrot.slane %v1472_v34, %v2298_v3  ;;  %v1490_v32 = vrot.slane %v1472_v34, %v2280_v53  ;;  %v1494_v50 = vrot.slane %v1472_v34, %v2294_v62 }
 0x4a3   :  { %v1502_v33 = vrot.slane %v1482_v26, %v2280_v53  ;;  %v1506_v61 = vrot.slane %v1486_v4, %v2280_v53  ;;  %v1554_v58 = vrot.slane %v1534_v22, %v2283_v54  ;;  %v1558_v6 = vrot.slane %v1538_v9, %v2283_v54 }
 0x4a4   :  { %v1510_v28 = vrot.slane %v1490_v32, %v2280_v53  ;;  %v1514_v41 = vrot.slane %v1494_v50, %v2280_v53  ;;  %v1562_v3 = vrot.slane %v1542_v63, %v2283_v54  ;;  %v1566_v21 = vrot.slane %v1546_v12, %v2283_v54 }
 0x4a5   :  { %v1515_v43 = vmul.f32 %v1502_v33, %v1475_v39  ;;  %v1516_v47 = vmul.f32 %v1506_v61, %v1475_v39  ;;  %v1630_v59 = vrot.slane %v1471_v19, %v2290_v60  ;;  %v1634_v2 = vrot.slane %v1471_v19, %v2308_v20 }
 0x4a6   :  { %v1517_v62 = vmul.f32 %v1510_v28, %v1475_v39  ;;  %v1518_v57 = vmul.f32 %v1514_v41, %v1475_v39  ;;  %v1567_v16 = vmul.f32 %v1554_v58, %v1529_v13  ;;  %v1568_v8 = vmul.f32 %v1558_v6, %v1529_v13  ;;  %v1689_v28 = vpop.permute.xlu1 %1688 }
 0x4a7   :  { %v1523_v44 = vadd.f32 %v1521_v0, %v1515_v43  ;;  %v1524_v46 = vadd.f32 %v1521_v0, %v1516_v47  ;;  %v1638_v38 = vrot.slane %v1472_v34, %v2290_v60  ;;  %v1642_v48 = vrot.slane %v1472_v34, %v2308_v20 }
 0x4a8   :  { %v1569_v15 = vmul.f32 %v1562_v3, %v1529_v13  ;;  %v1570_v23 = vmul.f32 %v1566_v21, %v1529_v13  ;;  %v1525_v49 = vadd.f32 %v1521_v0, %v1517_v62  ;;  %v1526_v14 = vadd.f32 %v1521_v0, %v1518_v57 }
 0x4a9   :  { %v1650_v17 = vrot.slane %v1630_v59, %v2290_v60  ;;  %v1654_v31 = vrot.slane %v1634_v2, %v2290_v60  ;;  %v1582_v42 = vrot.slane %v1471_v19, %v2286_v55  ;;  %v1586_v7 = vrot.slane %v1471_v19, %v2304_v11 }
 0x4aa   :  { %v1571_v30 = vadd.f32 %v1567_v16, %v1523_v44  ;;  %v1572_v1 = vadd.f32 %v1568_v8, %v1524_v46  ;;  %v1590_v25 = vrot.slane %v1472_v34, %v2286_v55  ;;  %v1594_v45 = vrot.slane %v1472_v34, %v2304_v11  ;;  %v1741_v13 = vpop.permute.xlu1 %1740 }
 0x4ab   :  { %v1658_v20 = vrot.slane %v1638_v38, %v2290_v60  ;;  %v1662_v56 = vrot.slane %v1642_v48, %v2290_v60  ;;  %v1602_v27 = vrot.slane %v1582_v42, %v2286_v55  ;;  %v1606_v36 = vrot.slane %v1586_v7, %v2286_v55 }
 0x4ac   :  { %v1573_v37 = vadd.f32 %v1569_v15, %v1525_v49  ;;  %v1574_v5 = vadd.f32 %v1570_v23, %v1526_v14  ;;  %v1610_v51 = vrot.slane %v1590_v25, %v2286_v55  ;;  %v1614_v10 = vrot.slane %v1594_v45, %v2286_v55  ;;  %v1713_v49 = vpop.permute.xlu0 %1712 }
 0x4ad   :  { %v1615_v18 = vmul.f32 %v1602_v27, %v1577_v35  ;;  %v1616_v24 = vmul.f32 %v1606_v36, %v1577_v35  ;;  %v1663_v34 = vmul.f32 %v1650_v17, %v1625_v40  ;;  %v1664_v22 = vmul.f32 %v1654_v31, %v1625_v40 }
 0x4ae   :  { %v1617_v19 = vmul.f32 %v1610_v51, %v1577_v35  ;;  %v1618_v11 = vmul.f32 %v1614_v10, %v1577_v35  ;;  %v1665_v4 = vmul.f32 %v1658_v20, %v1625_v40  ;;  %v1666_v0 = vmul.f32 %v1662_v56, %v1625_v40 }
 0x4af   :  { %v1619_v9 = vadd.f32 %v1615_v18, %v1571_v30  ;;  %v1620_v26 = vadd.f32 %v1616_v24, %v1572_v1  ;;  %v1769_v1 = vpop.permute.xlu1 %1768 }
 0x4b0   :  { %v1621_v63 = vadd.f32 %v1617_v19, %v1573_v37  ;;  %v1622_v12 = vadd.f32 %v1618_v11, %v1574_v5 }
 0x4b1   :  { %v1667_v32 = vadd.f32 %v1663_v34, %v1619_v9  ;;  %v1668_v50 = vadd.f32 %v1664_v22, %v1620_v26 }
 0x4b2   :  { %v1669_v33 = vadd.f32 %v1665_v4, %v1621_v63  ;;  %v1670_v61 = vadd.f32 %v1666_v0, %v1622_v12 }
 0x4b3   :  { %v1675_v41 = vrot.slane %v1667_v32, 4  ;;  %v1676_v39 = vrot.slane %v1668_v50, 4 }
 0x4b4   :  { %v1677_v58 = vrot.slane %v1669_v33, 4  ;;  %v1678_v6 = vrot.slane %v1670_v61, 4 }
 0x4b5   :  { %v1683_v43 = vmul.f32 %v1675_v41, %v1667_v32  ;;  %v1684_v47 = vmul.f32 %v1676_v39, %v1668_v50 }
 0x4b6   :  { %v1685_v3 = vmul.f32 %v1677_v58, %v1669_v33  ;;  %v1686_v21 = vmul.f32 %v1678_v6, %v1670_v61 }
 0x4b7   :  { %v1694_v62 = vrot.slane %v1683_v43, %v2280_v53  ;;  %v1698_v57 = vrot.slane %v1684_v47, %v2280_v53  ;;  %v1746_v44 = vrot.slane %v1683_v43, %v2286_v55  ;;  %v1750_v46 = vrot.slane %v1684_v47, %v2286_v55 }
 0x4b8   :  { %v1702_v59 = vrot.slane %v1685_v3, %v2280_v53  ;;  %v1706_v2 = vrot.slane %v1686_v21, %v2280_v53  ;;  %v1754_v16 = vrot.slane %v1685_v3, %v2286_v55  ;;  %v1758_v8 = vrot.slane %v1686_v21, %v2286_v55 }
 0x4b9   :  { %v1707_v38 = vmul.f32 %v1694_v62, %v1689_v28  ;;  %v1708_v48 = vmul.f32 %v1698_v57, %v1689_v28  ;;  %v1718_v14 = vrot.slane %v1683_v43, %v2283_v54  ;;  %v1722_v17 = vrot.slane %v1684_v47, %v2283_v54 }
 0x4ba   :  { %v1709_v15 = vmul.f32 %v1702_v59, %v1689_v28  ;;  %v1710_v23 = vmul.f32 %v1706_v2, %v1689_v28  ;;  %v1726_v53 = vrot.slane %v1685_v3, %v2283_v54  ;;  %v1730_v31 = vrot.slane %v1686_v21, %v2283_v54 }
 0x4bb   :  { %v1774_v42 = vrot.slane %v1683_v43, %v2290_v60  ;;  %v1778_v7 = vrot.slane %v1684_v47, %v2290_v60  ;;  %v1782_v30 = vrot.slane %v1685_v3, %v2290_v60  ;;  %v1786_v55 = vrot.slane %v1686_v21, %v2290_v60 }
 0x4bc   :  { %v1731_v25 = vmul.f32 %v1718_v14, %v1713_v49  ;;  %v1732_v45 = vmul.f32 %v1722_v17, %v1713_v49  ;;  %v1733_v35 = vmul.f32 %v1726_v53, %v1713_v49  ;;  %v1734_v20 = vmul.f32 %v1730_v31, %v1713_v49 }
 0x4bd   :  { %v1759_v56 = vmul.f32 %v1746_v44, %v1741_v13  ;;  %v1760_v27 = vmul.f32 %v1750_v46, %v1741_v13  ;;  %v1761_v36 = vmul.f32 %v1754_v16, %v1741_v13  ;;  %v1762_v40 = vmul.f32 %v1758_v8, %v1741_v13 }
 0x4be   :  { %v1735_v37 = vadd.f32 %v1731_v25, %v1707_v38  ;;  %v1736_v5 = vadd.f32 %v1732_v45, %v1708_v48  ;;  %v1737_v54 = vadd.f32 %v1733_v35, %v1709_v15  ;;  %v1738_v51 = vadd.f32 %v1734_v20, %v1710_v23 }
 0x4bf   :  { %v1787_v10 = vmul.f32 %v1774_v42, %v1769_v1  ;;  %v1788_v18 = vmul.f32 %v1778_v7, %v1769_v1  ;;  %v1789_v24 = vmul.f32 %v1782_v30, %v1769_v1  ;;  %v1790_v19 = vmul.f32 %v1786_v55, %v1769_v1 }
 0x4c0   :  { %v1763_v11 = vadd.f32 %v1759_v56, %v1735_v37  ;;  %v1764_v34 = vadd.f32 %v1760_v27, %v1736_v5  ;;  %v1765_v60 = vadd.f32 %v1761_v36, %v1737_v54  ;;  %v1766_v22 = vadd.f32 %v1762_v40, %v1738_v51 }
 0x4c2   :  { %v1791_v9 = vadd.f32 %v1787_v10, %v1763_v11  ;;  %v1792_v26 = vadd.f32 %v1788_v18, %v1764_v34  ;;  %v1793_v4 = vadd.f32 %v1789_v24, %v1765_v60  ;;  %v1794_v0 = vadd.f32 %v1790_v19, %v1766_v22 }
 0x4c4   :  { %v1799_v63 = vcombine.low %v1791_v9, %v1792_v26  ;;  %v1800_v12 = vcombine.low %v1793_v4, %v1794_v0 }
 0x4c6   :  { %v1803_v32 = vadd.f32 %v1799_v63, %v2808_v29  ;;  %v1804_v50 = vadd.f32 %v1800_v12, %v2811_v52 }
 0x4c8   :  { %1805 = vst [vmem:[#allocation10] sm:$0xff] %v1803_v32  ;;  %1806 = vst [vmem:[#allocation10 + $0x8] sm:$0xff] %v1804_v50 }
 0x4c9   :  { %2101 = shalt.err (!%p2098_p8)
}
 0x4ca   :  { %s2102_s30 = scalar_lea.hbm %s2900_s5, 256 }
 0x4cb   :  { %p2103_p9 = scmp.ne.s32.totalorder %s2900_s5, %s2102_s30  ;;  %p2106_p10 = scmp.lt.u32.totalorder %s2102_s30, %s2900_s5 }
 0x4cd   :  { %p2108_p11 = pnand %p2106_p10, %p2103_p9 }
 0x4cf   :  { %2111 = shalt.err (!%p2108_p11)
}
 0x4d0   :  { %1816 = dma.vmem_to_hbm [thread:$0]  %s1814_s21, 256, %s2900_s5, [#allocation4]  }
 0x4d1   :  { %2118 = dma.done.wait [#allocation4], 256  }
 0x4d2   :  { %2119 = vsyncadd [#allocation4], 4294967040 }
 0x4d3   :  { %1820 = vsyncpa [#allocation3], 1 }
 0x4d4   :  { %1821 = vsyncpa [#allocation6], 1 }
 0x4d5   :  { %1822 = vsyncpa [#allocation9], 1 }
 0x4d6   :  { %1823 = vsyncpa [#allocation4], 1 }

</bundles_post_ra>
